<compile_context>
chip_gen: v7x
topology: tpu7x:2x2x1
jax: 0.10.0
libtpu: 0.0.40
codegen_flags: <defaults>
</compile_context>

<pallas_src>
import jax
import jax.numpy as jnp
from jax.experimental import pallas as pl
from jax.experimental.pallas import tpu as pltpu

# ----- problem sizes (small, consistent with the module) -----
B, C, H, W = 2, 4, 16, 16   # input image (NCHW)
L = 8                       # latent channels
P = 8                       # prompt feature dim
HID = 32                    # unet hidden width
T = 10                      # diffusion steps (matches forward())
N = B * H * W               # flattened batch*spatial columns (on lanes) = 512

# Row layout of the packed param slabs (all starts are multiples of 8).
R_ENC0, R_ENC1 = 0, 16      # w_enc / b_enc  (2L rows)
R_U10, R_U11 = 16, 48       # w_u1 / b_u1    (HID rows)
R_U20, R_U21 = 48, 56       # w_u2 / b_u2    (L rows)
R_DEC0, R_DEC1 = 56, 64     # w_dec / b_dec  (C rows, padded to 8)
W_ROWS, W_COLS = 64, 32     # weight slab shape
OUT_ROWS = 24               # output slab: 0:8 xrec(+pad), 8:16 mean, 16:24 logvar


def sd_kernel(data_ref, w_ref, b_ref, out_ref):
    # ---- data slab slices (single DMA stream) ----
    xpad = data_ref[0:8, :]          # (8, N)  image channels, rows 4:8 are zero
    eps = data_ref[8:16, :]          # (L, N)  reparameterize noise
    add = data_ref[16:24, :]         # (L, N)  prompt embedding + summed fwd noise

    # ---- params: load once, reuse across the unrolled loop ----
    w_enc = w_ref[R_ENC0:R_ENC1, 0:8]        # (2L, 8)  cols 4:8 zero
    w_u1 = w_ref[R_U10:R_U11, 0:8]           # (HID, L)
    w_u2 = w_ref[R_U20:R_U21, :]             # (L, HID)
    w_dec = w_ref[R_DEC0:R_DEC1, 0:8]        # (8, L)   rows 4:8 zero
    b_enc = b_ref[R_ENC0:R_ENC1, :]          # (2L, 1)
    b_dec = b_ref[R_DEC0:R_DEC1, :]          # (8, 1)
    # UNet biases are used T times: broadcast to lane-dense form exactly once.
    b_u1 = jnp.broadcast_to(b_ref[R_U10:R_U11, :], (HID, N))
    b_u2 = jnp.broadcast_to(b_ref[R_U20:R_U21, :], (L, N))

    # ---- vae.encode: fused 1x1 conv -> [mean ; logvar] in one MXU pass ----
    ml = jnp.dot(w_enc, xpad, preferred_element_type=jnp.float32) + b_enc  # (2L, N)
    mean = ml[0:L, :]
    logvar = ml[L:2 * L, :]

    # Early writeback: mean/logvar do not stay live across the unet loop.
    out_ref[8:16, :] = mean
    out_ref[16:24, :] = logvar

    # ---- vae.reparameterize + prompt embedding + pre-reduced forward noise ----
    z = mean + jnp.exp(0.5 * logvar) * eps + add                           # (L, N)

    # ---- reverse diffusion with tiny UNet (two 1x1 convs + ReLU), unrolled ----
    for t in reversed(range(T)):
        h = jnp.maximum(
            jnp.dot(w_u1, z, preferred_element_type=jnp.float32) + b_u1, 0.0)  # (HID, N)
        noise_pred = jnp.dot(w_u2, h, preferred_element_type=jnp.float32) + b_u2  # (L, N)
        z = z - noise_pred * (0.1 / (t + 1))

    # ---- vae.decode: per-pixel linear back to image channels (row-padded) ----
    out_ref[0:8, :] = jnp.dot(w_dec, z, preferred_element_type=jnp.float32) + b_dec


def init_params(key):
    ks = jax.random.split(key, 6)
    s = 0.1
    return dict(
        w_mu=s * jax.random.normal(ks[0], (L, C), jnp.float32),
        b_mu=jnp.zeros((L,), jnp.float32),
        w_lv=s * jax.random.normal(ks[1], (L, C), jnp.float32),
        b_lv=jnp.zeros((L,), jnp.float32),
        w_p=s * jax.random.normal(ks[2], (P, L), jnp.float32),
        b_p=jnp.zeros((L,), jnp.float32),
        w_u1=s * jax.random.normal(ks[3], (HID, L), jnp.float32),
        b_u1=jnp.zeros((HID,), jnp.float32),
        w_u2=s * jax.random.normal(ks[4], (L, HID), jnp.float32),
        b_u2=jnp.zeros((L,), jnp.float32),
        w_dec=s * jax.random.normal(ks[5], (C, L), jnp.float32),
        b_dec=jnp.zeros((C,), jnp.float32),
    )


def pack_params(params):
    """Pack all weights/biases into two small, aligned VMEM slabs."""
    w_slab = jnp.zeros((W_ROWS, W_COLS), jnp.float32)
    w_enc = jnp.concatenate([params["w_mu"], params["w_lv"]], axis=0)      # (2L, C)
    w_slab = w_slab.at[R_ENC0:R_ENC1, 0:C].set(w_enc)
    w_slab = w_slab.at[R_U10:R_U11, 0:L].set(params["w_u1"])
    w_slab = w_slab.at[R_U20:R_U21, 0:HID].set(params["w_u2"])
    w_slab = w_slab.at[R_DEC0:R_DEC0 + C, 0:L].set(params["w_dec"])        # rows 60:64 stay 0

    b_slab = jnp.zeros((W_ROWS, 1), jnp.float32)
    b_enc = jnp.concatenate([params["b_mu"], params["b_lv"]])
    b_slab = b_slab.at[R_ENC0:R_ENC1, 0].set(b_enc)
    b_slab = b_slab.at[R_U10:R_U11, 0].set(params["b_u1"])
    b_slab = b_slab.at[R_U20:R_U21, 0].set(params["b_u2"])
    b_slab = b_slab.at[R_DEC0:R_DEC0 + C, 0].set(params["b_dec"])
    return w_slab, b_slab


def stable_diffusion_forward(x_nchw, prompt, eps, noise, params):
    # NCHW -> channels-on-sublanes, flattened (B*H*W) on lanes: (C, N),
    # zero-padded to 8 sublane rows so the encoder matmul uses a full tile.
    x_t = jnp.transpose(x_nchw, (1, 0, 2, 3)).reshape(C, N)
    x_pad = jnp.concatenate([x_t, jnp.zeros((8 - C, N), jnp.float32)], axis=0)

    # Prompt encoder (tiny (B,P)x(P,L) matmul) hoisted out of the kernel and
    # pre-broadcast over H*W to the lane-dense (L, N) layout.
    pe = prompt @ params["w_p"] + params["b_p"]                            # (B, L)
    pe_full = jnp.broadcast_to(pe.T[:, :, None], (L, B, H * W)).reshape(L, N)

    # Pre-reduce the T forward-diffusion noise steps to one (L, N) tensor.
    # (f32 summation order differs from step-by-step; negligible drift.)
    scales = 0.1 / (jnp.arange(T, dtype=jnp.float32) + 1.0)                # (T,)
    noise_sum = jnp.einsum("t,tln->ln", scales, noise)                     # (L, N)
    add_t = pe_full + noise_sum

    # Single data slab: x (padded), eps, prompt+noise term.
    data_slab = jnp.concatenate([x_pad, eps, add_t], axis=0)               # (24, N)
    w_slab, b_slab = pack_params(params)

    out_slab = pl.pallas_call(
        sd_kernel,
        out_shape=jax.ShapeDtypeStruct((OUT_ROWS, N), jnp.float32),
        in_specs=[pl.BlockSpec(memory_space=pltpu.MemorySpace.VMEM)] * 3,
        out_specs=pl.BlockSpec(memory_space=pltpu.MemorySpace.VMEM),
    )(data_slab, w_slab, b_slab)

    xrec_t = out_slab[0:C, :]
    mean_t = out_slab[8:16, :]
    logvar_t = out_slab[16:24, :]

    def to_nchw(a, ch):
        return jnp.transpose(a.reshape(ch, B, H, W), (1, 0, 2, 3))

    return to_nchw(xrec_t, C), to_nchw(mean_t, L), to_nchw(logvar_t, L)


if __name__ == "__main__":
    key = jax.random.PRNGKey(0)
    k_x, k_prompt, k_eps, k_noise, k_params = jax.random.split(key, 5)

    x = jax.random.normal(k_x, (B, C, H, W), jnp.float32)      # NCHW input
    prompt = jax.random.normal(k_prompt, (B, P), jnp.float32)
    # TODO(synk): torch.randn_like's RNG has no in-kernel equivalent; the
    # Gaussian draws (reparameterize eps + T diffusion noises) are pre-sampled
    # deterministically here in the kernel's (channels, B*H*W) layout.
    eps = jax.random.normal(k_eps, (L, N), jnp.float32)
    noise = jax.random.normal(k_noise, (T, L, N), jnp.float32)

    params = init_params(k_params)

    fwd = jax.jit(lambda xx, pp, ee, nn: stable_diffusion_forward(xx, pp, ee, nn, params))
    x_rec, mean, logvar = fwd(x, prompt, eps, noise)
    jax.block_until_ready((x_rec, mean, logvar))

    assert x_rec.shape == (B, C, H, W)
    assert mean.shape == (B, L, H, W)
    assert logvar.shape == (B, L, H, W)
    print("KERNEL_OK")
</pallas_src>

<mosaic_0001>
module attributes {stable_mosaic.version = 11 : i64} {
  func.func @sd_kernel(%arg0: memref<24x512xf32, #tpu.memory_space<vmem>>, %arg1: memref<64x32xf32, #tpu.memory_space<vmem>>, %arg2: memref<64x1xf32, #tpu.memory_space<vmem>>, %arg3: memref<24x512xf32, #tpu.memory_space<vmem>>) attributes {dimension_semantics = [], scalar_prefetch = 0 : i64, scratch_operands = 0 : i64, tpu.core_type = #tpu.core_type<tc>} {
    %c0 = arith.constant 0 : index
    %c0_0 = arith.constant 0 : index
    %0 = vector.load %arg0[%c0, %c0_0] : memref<24x512xf32, #tpu.memory_space<vmem>>, vector<8x512xf32>
    %c8 = arith.constant 8 : index
    %c0_1 = arith.constant 0 : index
    %1 = vector.load %arg0[%c8, %c0_1] : memref<24x512xf32, #tpu.memory_space<vmem>>, vector<8x512xf32>
    %c16 = arith.constant 16 : index
    %c0_2 = arith.constant 0 : index
    %2 = vector.load %arg0[%c16, %c0_2] : memref<24x512xf32, #tpu.memory_space<vmem>>, vector<8x512xf32>
    %c0_3 = arith.constant 0 : index
    %c0_4 = arith.constant 0 : index
    %3 = vector.load %arg1[%c0_3, %c0_4] : memref<64x32xf32, #tpu.memory_space<vmem>>, vector<16x8xf32>
    %c16_5 = arith.constant 16 : index
    %c0_6 = arith.constant 0 : index
    %4 = vector.load %arg1[%c16_5, %c0_6] : memref<64x32xf32, #tpu.memory_space<vmem>>, vector<32x8xf32>
    %c48 = arith.constant 48 : index
    %c0_7 = arith.constant 0 : index
    %5 = vector.load %arg1[%c48, %c0_7] : memref<64x32xf32, #tpu.memory_space<vmem>>, vector<8x32xf32>
    %c56 = arith.constant 56 : index
    %c0_8 = arith.constant 0 : index
    %6 = vector.load %arg1[%c56, %c0_8] : memref<64x32xf32, #tpu.memory_space<vmem>>, vector<8x8xf32>
    %c0_9 = arith.constant 0 : index
    %c0_10 = arith.constant 0 : index
    %7 = vector.load %arg2[%c0_9, %c0_10] : memref<64x1xf32, #tpu.memory_space<vmem>>, vector<16x1xf32>
    %c56_11 = arith.constant 56 : index
    %c0_12 = arith.constant 0 : index
    %8 = vector.load %arg2[%c56_11, %c0_12] : memref<64x1xf32, #tpu.memory_space<vmem>>, vector<8x1xf32>
    %c16_13 = arith.constant 16 : index
    %c0_14 = arith.constant 0 : index
    %9 = vector.load %arg2[%c16_13, %c0_14] : memref<64x1xf32, #tpu.memory_space<vmem>>, vector<32x1xf32>
    %10 = vector.shape_cast %9 : vector<32x1xf32> to vector<32x1xf32>
    %11 = vector.broadcast %10 : vector<32x1xf32> to vector<32x512xf32>
    %c48_15 = arith.constant 48 : index
    %c0_16 = arith.constant 0 : index
    %12 = vector.load %arg2[%c48_15, %c0_16] : memref<64x1xf32, #tpu.memory_space<vmem>>, vector<8x1xf32>
    %13 = vector.shape_cast %12 : vector<8x1xf32> to vector<8x1xf32>
    %14 = vector.broadcast %13 : vector<8x1xf32> to vector<8x512xf32>
    %cst = arith.constant dense<0.000000e+00> : vector<16x512xf32>
    %15 = tpu.matmul %3, %0, %cst {dimension_numbers = #tpu.dot_dimension_numbers<[1], [0], [0], [1], [0, 0, 1, 1], [], []>} : vector<16x8xf32>, vector<8x512xf32>, vector<16x512xf32> -> vector<16x512xf32>
    %16 = vector.broadcast %7 : vector<16x1xf32> to vector<16x512xf32>
    %17 = arith.addf %15, %16 : vector<16x512xf32>
    %18 = vector.extract_strided_slice %17 {offsets = [0, 0], sizes = [8, 512], strides = [1, 1]} : vector<16x512xf32> to vector<8x512xf32>
    %19 = vector.extract_strided_slice %17 {offsets = [8, 0], sizes = [8, 512], strides = [1, 1]} : vector<16x512xf32> to vector<8x512xf32>
    %c8_17 = arith.constant 8 : index
    %c0_18 = arith.constant 0 : index
    %20 = vector.load %arg3[%c8_17, %c0_18] : memref<24x512xf32, #tpu.memory_space<vmem>>, vector<8x512xf32>
    tpu.vector_store %arg3[%c8_17, %c0_18], %18 {strides = array<i32>} : memref<24x512xf32, #tpu.memory_space<vmem>>, vector<8x512xf32>,
    %c16_19 = arith.constant 16 : index
    %c0_20 = arith.constant 0 : index
    %21 = vector.load %arg3[%c16_19, %c0_20] : memref<24x512xf32, #tpu.memory_space<vmem>>, vector<8x512xf32>
    tpu.vector_store %arg3[%c16_19, %c0_20], %19 {strides = array<i32>} : memref<24x512xf32, #tpu.memory_space<vmem>>, vector<8x512xf32>,
    %cst_21 = arith.constant 5.000000e-01 : f32
    %22 = vector.broadcast %cst_21 : f32 to vector<8x512xf32>
    %23 = arith.mulf %22, %19 : vector<8x512xf32>
    %24 = math.exp %23 : vector<8x512xf32>
    %25 = arith.mulf %24, %1 : vector<8x512xf32>
    %26 = arith.addf %18, %25 : vector<8x512xf32>
    %27 = arith.addf %26, %2 : vector<8x512xf32>
    %cst_22 = arith.constant dense<0.000000e+00> : vector<32x512xf32>
    %28 = tpu.matmul %4, %27, %cst_22 {dimension_numbers = #tpu.dot_dimension_numbers<[1], [0], [0], [1], [0, 0, 1, 1], [], []>} : vector<32x8xf32>, vector<8x512xf32>, vector<32x512xf32> -> vector<32x512xf32>
    %29 = arith.addf %28, %11 : vector<32x512xf32>
    %cst_23 = arith.constant 0.000000e+00 : f32
    %30 = vector.broadcast %cst_23 : f32 to vector<32x512xf32>
    %31 = arith.maximumf %29, %30 : vector<32x512xf32>
    %cst_24 = arith.constant dense<0.000000e+00> : vector<8x512xf32>
    %32 = tpu.matmul %5, %31, %cst_24 {dimension_numbers = #tpu.dot_dimension_numbers<[1], [0], [0], [1], [0, 0, 1, 1], [], []>} : vector<8x32xf32>, vector<32x512xf32>, vector<8x512xf32> -> vector<8x512xf32>
    %33 = arith.addf %32, %14 : vector<8x512xf32>
    %cst_25 = arith.constant 0.00999999977 : f32
    %34 = vector.broadcast %cst_25 : f32 to vector<8x512xf32>
    %35 = arith.mulf %33, %34 : vector<8x512xf32>
    %36 = arith.subf %27, %35 : vector<8x512xf32>
    %cst_26 = arith.constant dense<0.000000e+00> : vector<32x512xf32>
    %37 = tpu.matmul %4, %36, %cst_26 {dimension_numbers = #tpu.dot_dimension_numbers<[1], [0], [0], [1], [0, 0, 1, 1], [], []>} : vector<32x8xf32>, vector<8x512xf32>, vector<32x512xf32> -> vector<32x512xf32>
    %38 = arith.addf %37, %11 : vector<32x512xf32>
    %cst_27 = arith.constant 0.000000e+00 : f32
    %39 = vector.broadcast %cst_27 : f32 to vector<32x512xf32>
    %40 = arith.maximumf %38, %39 : vector<32x512xf32>
    %cst_28 = arith.constant dense<0.000000e+00> : vector<8x512xf32>
    %41 = tpu.matmul %5, %40, %cst_28 {dimension_numbers = #tpu.dot_dimension_numbers<[1], [0], [0], [1], [0, 0, 1, 1], [], []>} : vector<8x32xf32>, vector<32x512xf32>, vector<8x512xf32> -> vector<8x512xf32>
    %42 = arith.addf %41, %14 : vector<8x512xf32>
    %cst_29 = arith.constant 0.0111111114 : f32
    %43 = vector.broadcast %cst_29 : f32 to vector<8x512xf32>
    %44 = arith.mulf %42, %43 : vector<8x512xf32>
    %45 = arith.subf %36, %44 : vector<8x512xf32>
    %cst_30 = arith.constant dense<0.000000e+00> : vector<32x512xf32>
    %46 = tpu.matmul %4, %45, %cst_30 {dimension_numbers = #tpu.dot_dimension_numbers<[1], [0], [0], [1], [0, 0, 1, 1], [], []>} : vector<32x8xf32>, vector<8x512xf32>, vector<32x512xf32> -> vector<32x512xf32>
    %47 = arith.addf %46, %11 : vector<32x512xf32>
    %cst_31 = arith.constant 0.000000e+00 : f32
    %48 = vector.broadcast %cst_31 : f32 to vector<32x512xf32>
    %49 = arith.maximumf %47, %48 : vector<32x512xf32>
    %cst_32 = arith.constant dense<0.000000e+00> : vector<8x512xf32>
    %50 = tpu.matmul %5, %49, %cst_32 {dimension_numbers = #tpu.dot_dimension_numbers<[1], [0], [0], [1], [0, 0, 1, 1], [], []>} : vector<8x32xf32>, vector<32x512xf32>, vector<8x512xf32> -> vector<8x512xf32>
    %51 = arith.addf %50, %14 : vector<8x512xf32>
    %cst_33 = arith.constant 1.250000e-02 : f32
    %52 = vector.broadcast %cst_33 : f32 to vector<8x512xf32>
    %53 = arith.mulf %51, %52 : vector<8x512xf32>
    %54 = arith.subf %45, %53 : vector<8x512xf32>
    %cst_34 = arith.constant dense<0.000000e+00> : vector<32x512xf32>
    %55 = tpu.matmul %4, %54, %cst_34 {dimension_numbers = #tpu.dot_dimension_numbers<[1], [0], [0], [1], [0, 0, 1, 1], [], []>} : vector<32x8xf32>, vector<8x512xf32>, vector<32x512xf32> -> vector<32x512xf32>
    %56 = arith.addf %55, %11 : vector<32x512xf32>
    %cst_35 = arith.constant 0.000000e+00 : f32
    %57 = vector.broadcast %cst_35 : f32 to vector<32x512xf32>
    %58 = arith.maximumf %56, %57 : vector<32x512xf32>
    %cst_36 = arith.constant dense<0.000000e+00> : vector<8x512xf32>
    %59 = tpu.matmul %5, %58, %cst_36 {dimension_numbers = #tpu.dot_dimension_numbers<[1], [0], [0], [1], [0, 0, 1, 1], [], []>} : vector<8x32xf32>, vector<32x512xf32>, vector<8x512xf32> -> vector<8x512xf32>
    %60 = arith.addf %59, %14 : vector<8x512xf32>
    %cst_37 = arith.constant 0.0142857144 : f32
    %61 = vector.broadcast %cst_37 : f32 to vector<8x512xf32>
    %62 = arith.mulf %60, %61 : vector<8x512xf32>
    %63 = arith.subf %54, %62 : vector<8x512xf32>
    %cst_38 = arith.constant dense<0.000000e+00> : vector<32x512xf32>
    %64 = tpu.matmul %4, %63, %cst_38 {dimension_numbers = #tpu.dot_dimension_numbers<[1], [0], [0], [1], [0, 0, 1, 1], [], []>} : vector<32x8xf32>, vector<8x512xf32>, vector<32x512xf32> -> vector<32x512xf32>
    %65 = arith.addf %64, %11 : vector<32x512xf32>
    %cst_39 = arith.constant 0.000000e+00 : f32
    %66 = vector.broadcast %cst_39 : f32 to vector<32x512xf32>
    %67 = arith.maximumf %65, %66 : vector<32x512xf32>
    %cst_40 = arith.constant dense<0.000000e+00> : vector<8x512xf32>
    %68 = tpu.matmul %5, %67, %cst_40 {dimension_numbers = #tpu.dot_dimension_numbers<[1], [0], [0], [1], [0, 0, 1, 1], [], []>} : vector<8x32xf32>, vector<32x512xf32>, vector<8x512xf32> -> vector<8x512xf32>
    %69 = arith.addf %68, %14 : vector<8x512xf32>
    %cst_41 = arith.constant 0.0166666675 : f32
    %70 = vector.broadcast %cst_41 : f32 to vector<8x512xf32>
    %71 = arith.mulf %69, %70 : vector<8x512xf32>
    %72 = arith.subf %63, %71 : vector<8x512xf32>
    %cst_42 = arith.constant dense<0.000000e+00> : vector<32x512xf32>
    %73 = tpu.matmul %4, %72, %cst_42 {dimension_numbers = #tpu.dot_dimension_numbers<[1], [0], [0], [1], [0, 0, 1, 1], [], []>} : vector<32x8xf32>, vector<8x512xf32>, vector<32x512xf32> -> vector<32x512xf32>
    %74 = arith.addf %73, %11 : vector<32x512xf32>
    %cst_43 = arith.constant 0.000000e+00 : f32
    %75 = vector.broadcast %cst_43 : f32 to vector<32x512xf32>
    %76 = arith.maximumf %74, %75 : vector<32x512xf32>
    %cst_44 = arith.constant dense<0.000000e+00> : vector<8x512xf32>
    %77 = tpu.matmul %5, %76, %cst_44 {dimension_numbers = #tpu.dot_dimension_numbers<[1], [0], [0], [1], [0, 0, 1, 1], [], []>} : vector<8x32xf32>, vector<32x512xf32>, vector<8x512xf32> -> vector<8x512xf32>
    %78 = arith.addf %77, %14 : vector<8x512xf32>
    %cst_45 = arith.constant 2.000000e-02 : f32
    %79 = vector.broadcast %cst_45 : f32 to vector<8x512xf32>
    %80 = arith.mulf %78, %79 : vector<8x512xf32>
    %81 = arith.subf %72, %80 : vector<8x512xf32>
    %cst_46 = arith.constant dense<0.000000e+00> : vector<32x512xf32>
    %82 = tpu.matmul %4, %81, %cst_46 {dimension_numbers = #tpu.dot_dimension_numbers<[1], [0], [0], [1], [0, 0, 1, 1], [], []>} : vector<32x8xf32>, vector<8x512xf32>, vector<32x512xf32> -> vector<32x512xf32>
    %83 = arith.addf %82, %11 : vector<32x512xf32>
    %cst_47 = arith.constant 0.000000e+00 : f32
    %84 = vector.broadcast %cst_47 : f32 to vector<32x512xf32>
    %85 = arith.maximumf %83, %84 : vector<32x512xf32>
    %cst_48 = arith.constant dense<0.000000e+00> : vector<8x512xf32>
    %86 = tpu.matmul %5, %85, %cst_48 {dimension_numbers = #tpu.dot_dimension_numbers<[1], [0], [0], [1], [0, 0, 1, 1], [], []>} : vector<8x32xf32>, vector<32x512xf32>, vector<8x512xf32> -> vector<8x512xf32>
    %87 = arith.addf %86, %14 : vector<8x512xf32>
    %cst_49 = arith.constant 2.500000e-02 : f32
    %88 = vector.broadcast %cst_49 : f32 to vector<8x512xf32>
    %89 = arith.mulf %87, %88 : vector<8x512xf32>
    %90 = arith.subf %81, %89 : vector<8x512xf32>
    %cst_50 = arith.constant dense<0.000000e+00> : vector<32x512xf32>
    %91 = tpu.matmul %4, %90, %cst_50 {dimension_numbers = #tpu.dot_dimension_numbers<[1], [0], [0], [1], [0, 0, 1, 1], [], []>} : vector<32x8xf32>, vector<8x512xf32>, vector<32x512xf32> -> vector<32x512xf32>
    %92 = arith.addf %91, %11 : vector<32x512xf32>
    %cst_51 = arith.constant 0.000000e+00 : f32
    %93 = vector.broadcast %cst_51 : f32 to vector<32x512xf32>
    %94 = arith.maximumf %92, %93 : vector<32x512xf32>
    %cst_52 = arith.constant dense<0.000000e+00> : vector<8x512xf32>
    %95 = tpu.matmul %5, %94, %cst_52 {dimension_numbers = #tpu.dot_dimension_numbers<[1], [0], [0], [1], [0, 0, 1, 1], [], []>} : vector<8x32xf32>, vector<32x512xf32>, vector<8x512xf32> -> vector<8x512xf32>
    %96 = arith.addf %95, %14 : vector<8x512xf32>
    %cst_53 = arith.constant 0.0333333351 : f32
    %97 = vector.broadcast %cst_53 : f32 to vector<8x512xf32>
    %98 = arith.mulf %96, %97 : vector<8x512xf32>
    %99 = arith.subf %90, %98 : vector<8x512xf32>
    %cst_54 = arith.constant dense<0.000000e+00> : vector<32x512xf32>
    %100 = tpu.matmul %4, %99, %cst_54 {dimension_numbers = #tpu.dot_dimension_numbers<[1], [0], [0], [1], [0, 0, 1, 1], [], []>} : vector<32x8xf32>, vector<8x512xf32>, vector<32x512xf32> -> vector<32x512xf32>
    %101 = arith.addf %100, %11 : vector<32x512xf32>
    %cst_55 = arith.constant 0.000000e+00 : f32
    %102 = vector.broadcast %cst_55 : f32 to vector<32x512xf32>
    %103 = arith.maximumf %101, %102 : vector<32x512xf32>
    %cst_56 = arith.constant dense<0.000000e+00> : vector<8x512xf32>
    %104 = tpu.matmul %5, %103, %cst_56 {dimension_numbers = #tpu.dot_dimension_numbers<[1], [0], [0], [1], [0, 0, 1, 1], [], []>} : vector<8x32xf32>, vector<32x512xf32>, vector<8x512xf32> -> vector<8x512xf32>
    %105 = arith.addf %104, %14 : vector<8x512xf32>
    %cst_57 = arith.constant 5.000000e-02 : f32
    %106 = vector.broadcast %cst_57 : f32 to vector<8x512xf32>
    %107 = arith.mulf %105, %106 : vector<8x512xf32>
    %108 = arith.subf %99, %107 : vector<8x512xf32>
    %cst_58 = arith.constant dense<0.000000e+00> : vector<32x512xf32>
    %109 = tpu.matmul %4, %108, %cst_58 {dimension_numbers = #tpu.dot_dimension_numbers<[1], [0], [0], [1], [0, 0, 1, 1], [], []>} : vector<32x8xf32>, vector<8x512xf32>, vector<32x512xf32> -> vector<32x512xf32>
    %110 = arith.addf %109, %11 : vector<32x512xf32>
    %cst_59 = arith.constant 0.000000e+00 : f32
    %111 = vector.broadcast %cst_59 : f32 to vector<32x512xf32>
    %112 = arith.maximumf %110, %111 : vector<32x512xf32>
    %cst_60 = arith.constant dense<0.000000e+00> : vector<8x512xf32>
    %113 = tpu.matmul %5, %112, %cst_60 {dimension_numbers = #tpu.dot_dimension_numbers<[1], [0], [0], [1], [0, 0, 1, 1], [], []>} : vector<8x32xf32>, vector<32x512xf32>, vector<8x512xf32> -> vector<8x512xf32>
    %114 = arith.addf %113, %14 : vector<8x512xf32>
    %cst_61 = arith.constant 1.000000e-01 : f32
    %115 = vector.broadcast %cst_61 : f32 to vector<8x512xf32>
    %116 = arith.mulf %114, %115 : vector<8x512xf32>
    %117 = arith.subf %108, %116 : vector<8x512xf32>
    %cst_62 = arith.constant dense<0.000000e+00> : vector<8x512xf32>
    %118 = tpu.matmul %6, %117, %cst_62 {dimension_numbers = #tpu.dot_dimension_numbers<[1], [0], [0], [1], [0, 0, 1, 1], [], []>} : vector<8x8xf32>, vector<8x512xf32>, vector<8x512xf32> -> vector<8x512xf32>
    %119 = vector.broadcast %8 : vector<8x1xf32> to vector<8x512xf32>
    %120 = arith.addf %118, %119 : vector<8x512xf32>
    %c0_63 = arith.constant 0 : index
    %c0_64 = arith.constant 0 : index
    %121 = vector.load %arg3[%c0_63, %c0_64] : memref<24x512xf32, #tpu.memory_space<vmem>>, vector<8x512xf32>
    tpu.vector_store %arg3[%c0_63, %c0_64], %120 {strides = array<i32>} : memref<24x512xf32, #tpu.memory_space<vmem>>, vector<8x512xf32>,
    return
  }
}

</mosaic_0001>

<bundles_post_ra>
// kernel: _lambda_.1
= control target key start
LH: loop header
LB: loop body
LE: loop exit
PB: predicated region body
PF: predicated region fallthrough
CT: control target
= control target key end

     0   :  { %v4167_v3 = vmov 0.0   ;;  %vm77_vm0 = vcmask 64512   ;;  %v4168_v8 = vmov 0   ;;  %vm476_vm1 = vcmask 261120   ;;  %s5026_s0 = inlined_call_operand.vmem [shape: f32[24,512], index: 0, kind: input, shape index: {}]   ;;  %s5027_s1 = inlined_call_operand.vmem [shape: f32[64,32], index: 1, kind: input, shape index: {}]   ;;  %s5028_s2 = inlined_call_operand.vmem [shape: f32[64,1], index: 2, kind: input, shape index: {}]   ;;  %s5029_s3 = inlined_call_operand.vmem [shape: f32[24,512], index: 3, kind: output, shape index: {}]  }
   0x1   :  { %v15_v0 = vld [vmem:[%s5026_s0 + $0x8] sm:$0xff]  ;;  %v17_v1 = vld [vmem:[%s5026_s0 + $0x18] sm:$0xff]  ;;  %v14_v2 = vld [vmem:[%s5026_s0] sm:$0xff]  ;;  %148 = vmatprep.mubr.f32.mxu0 %v4167_v3  ;;  %225 = vmatprep.mubr.f32.mxu1 %v4167_v3 }
   0x2   :  { %84 = vmatprep.subr.mxu0 %v15_v0  ;;  %161 = vmatprep.subr.mxu1 %v17_v1  ;;  %v16_v4 = vld [vmem:[%s5026_s0 + $0x10] sm:$0xff]  ;;  %v26_v5 = vld [vmem:[%s5027_s1] sm:$0xff]  ;;  %v35_v6 = vld [vmem:[%s5028_s2 + $0x8] sm:$0xff] }
   0x3   :  { %85 = vmatpush1.msra.mxu0 %v14_v2  ;;  %162 = vmatpush1.msra.mxu1 %v16_v4  ;;  %v27_v7 = vld [vmem:[%s5027_s1 + $0x8] sm:$0xff]  ;;  %v34_v9 = vld [vmem:[%s5028_s2] sm:$0xff]  ;;  %v61_v11 = vld [vmem:[%s5028_s2 + $0x30] sm:$0xff] }
   0x4   :  { %3884 = vmatmul.mubr.msk.f32.vlgmr.msra.gmra.mrb[0].mxu0 %vm77_vm0, %v26_v5  ;;  %3886 = vmatmul.mubr.msk.f32.vlgmr.msra.gmra.mrb[0].mxu1 %vm77_vm0, %v26_v5  ;;  %v39_v10 = vld [vmem:[%s5028_s2 + $0x20] sm:$0xff]  ;;  %v37_v12 = vld [vmem:[%s5028_s2 + $0x10] sm:$0xff]  ;;  %v38_v13 = vld [vmem:[%s5028_s2 + $0x18] sm:$0xff] }
   0x5   :  { %154 = vmatprep.mubr.f32.mxu0 %v4167_v3  ;;  %231 = vmatprep.mubr.f32.mxu1 %v4167_v3  ;;  %v40_v14 = vld [vmem:[%s5028_s2 + $0x28] sm:$0xff]  ;;  %v36_v15 = vld [vmem:[%s5028_s2 + $0x38] sm:$0xff]  ;;  %v18_v42 = vld [vmem:[%s5026_s0 + $0x20] sm:$0xff] }
   0x6   :  { %4152 = vset.pattern.permute.xlu0 %v4168_v8  ;;  %4153 = vset.pattern.permute.xlu1 %v4168_v8  ;;  %v20_v43 = vld [vmem:[%s5026_s0 + $0x30] sm:$0xff]  ;;  %v19_v45 = vld [vmem:[%s5026_s0 + $0x28] sm:$0xff]  ;;  %v21_v47 = vld [vmem:[%s5026_s0 + $0x38] sm:$0xff] }
   0x7   :  { %74 = vperm.xlu0 %4152, %v35_v6   ;;  %43 = vperm.xlu1 %4153, %v37_v12   ;;  %v23_v54 = vld [vmem:[%s5026_s0 + $0x48] sm:$0xff]  ;;  %v25_v58 = vld [vmem:[%s5026_s0 + $0x58] sm:$0xff]  ;;  %v22_v59 = vld [vmem:[%s5026_s0 + $0x40] sm:$0xff] }
   0x8   :  { %3885 = vmatmul.mubr.msk.f32.gmra.mrb[2].mxu0 %vm77_vm0, %v27_v7  ;;  %3887 = vmatmul.mubr.msk.f32.gmra.mrb[2].mxu1 %vm77_vm0, %v27_v7  ;;  %v24_v61 = vld [vmem:[%s5026_s0 + $0x50] sm:$0xff]  ;;  %v4311_v4 = vld [vmem:[%s5027_s1 + $0x18] sm:$0xff]  ;;  %v4322_v5 = vld [vmem:[%s5027_s1 + $0x20] sm:$0xff] }
   0x9   :  { %346 = vmatprep.mubr.f32.mxu0 %v4167_v3  ;;  %435 = vmatprep.mubr.f32.mxu1 %v4167_v3  ;;  %v4294_v63 = vld [vmem:[%s5027_s1 + $0x10] sm:$0xff]  ;;  %v4333_v6 = vld [vmem:[%s5027_s1 + $0x28] sm:$0xff] }
   0xb   :  { %69 = vperm.xlu0 %4152, %v34_v9   ;;  %48 = vperm.xlu1 %4153, %v38_v13  }
   0xf   :  { %53 = vperm.xlu0 %4152, %v39_v10   ;;  %58 = vperm.xlu1 %4153, %v40_v14  }
  0x13   :  { %64 = vperm.xlu0 %4152, %v61_v11   ;;  %3728 = vperm.xlu1 %4153, %v36_v15  }
  0x86   :  { %v75_v16 = vpop.permute.xlu0 %74  ;;  %v4345_v7 = vpop.permute.xlu1 %43 }
  0x8a   :  { %v70_v17 = vpop.permute.xlu0 %69  ;;  %v4348_v13 = vpop.permute.xlu1 %48 }
  0xd7   :  { %v150_v18 = vpop.f32.mrb[0].mxu0  ;;  %v227_v19 = vpop.f32.mrb[0].mxu1 }
  0xd8   :  { %v151_v20 = vadd.f32 %v150_v18, %v70_v17  ;;  %v228_v21 = vadd.f32 %v227_v19, %v70_v17  ;;  %v152_v22 = vpop.f32.mrb[1].mxu0  ;;  %v229_v23 = vpop.f32.mrb[1].mxu1 }
  0xd9   :  { %v153_v24 = vadd.f32 %v152_v22, %v70_v17  ;;  %v230_v25 = vadd.f32 %v229_v23, %v70_v17 }
  0xda   :  { %238 = vst [vmem:[%s5029_s3 + $0x20] sm:$0xff] %v151_v20  ;;  %240 = vst [vmem:[%s5029_s3 + $0x30] sm:$0xff] %v228_v21 }
  0xdb   :  { %239 = vst [vmem:[%s5029_s3 + $0x28] sm:$0xff] %v153_v24  ;;  %241 = vst [vmem:[%s5029_s3 + $0x38] sm:$0xff] %v230_v25  ;;  %v156_v26 = vpop.f32.mrb[2].mxu0  ;;  %v233_v27 = vpop.f32.mrb[2].mxu1 }
  0xdc   :  { %v157_v28 = vadd.f32 %v156_v26, %v75_v16  ;;  %v234_v29 = vadd.f32 %v233_v27, %v75_v16  ;;  %v158_v30 = vpop.f32.mrb[3].mxu0  ;;  %v235_v31 = vpop.f32.mrb[3].mxu1 }
  0xdd   :  { %v159_v32 = vadd.f32 %v158_v30, %v75_v16  ;;  %v236_v33 = vadd.f32 %v235_v31, %v75_v16 }
  0xde   :  { %242 = vst [vmem:[%s5029_s3 + $0x40] sm:$0xff] %v157_v28  ;;  %v246_v34 = vmul.f32 0.5, %v157_v28  ;;  %244 = vst [vmem:[%s5029_s3 + $0x50] sm:$0xff] %v234_v29  ;;  %v248_v35 = vmul.f32 0.5, %v234_v29 }
  0xdf   :  { %243 = vst [vmem:[%s5029_s3 + $0x48] sm:$0xff] %v159_v32  ;;  %v247_v36 = vmul.f32 0.5, %v159_v32  ;;  %245 = vst [vmem:[%s5029_s3 + $0x58] sm:$0xff] %v236_v33  ;;  %v249_v37 = vmul.f32 0.5, %v236_v33 }
  0xe0   :  { %v250_v38 = vmul.f32 1.442695, %v246_v34  ;;  %v254_v39 = vmul.f32 1.442695, %v248_v35 }
  0xe1   :  { %v252_v40 = vmul.f32 1.442695, %v247_v36  ;;  %v256_v41 = vmul.f32 1.442695, %v249_v37  ;;  %v4357_v37 = vpop.permute.xlu0 %53 }
  0xe2   :  { %4154 = vpow2.f32 %v250_v38 }
  0xe3   :  { %4156 = vpow2.f32 %v254_v39 }
  0xe4   :  { %4158 = vpow2.f32 %v252_v40 }
  0xe5   :  { %4160 = vpow2.f32 %v256_v41 }
  0xec   :  { %v4155_v44 = vpop.eup %4154 }
  0xed   :  { %v4157_v46 = vpop.eup %4156  ;;  %v258_v48 = vmul.f32 %v4155_v44, %v18_v42 }
  0xee   :  { %v4159_v49 = vpop.eup %4158  ;;  %v260_v50 = vmul.f32 %v4157_v46, %v20_v43  ;;  %v4360_v43 = vpop.permute.xlu1 %58 }
  0xef   :  { %v4161_v51 = vpop.eup %4160  ;;  %v259_v52 = vmul.f32 %v4159_v49, %v19_v45  ;;  %v262_v53 = vadd.f32 %v258_v48, %v151_v20 }
  0xf0   :  { %v261_v55 = vmul.f32 %v4161_v51, %v21_v47  ;;  %v264_v56 = vadd.f32 %v260_v50, %v228_v21 }
  0xf1   :  { %v263_v57 = vadd.f32 %v259_v52, %v153_v24  ;;  %v4298_v1 = vadd.f32 %v262_v53, %v22_v59 }
  0xf2   :  { %v265_v60 = vadd.f32 %v261_v55, %v230_v25  ;;  %v4301_v2 = vadd.f32 %v264_v56, %v24_v61 }
  0xf3   :  { %v4289_v62 = vadd.f32 %v263_v57, %v23_v54 }
  0xf4   :  { %v4296_v0 = vadd.f32 %v265_v60, %v25_v58 }
  0xf5   :  { %282 = vmatprep.subr.mxu0 %v4289_v62 }
  0xf6   :  { %371 = vmatprep.subr.mxu1 %v4296_v0  ;;  %283 = vmatpush1.msra.mxu0 %v4298_v1 }
  0xf7   :  { %372 = vmatpush1.msra.mxu1 %v4301_v2  ;;  %3888 = vmatmul.mubr.msk.f32.vlgmr.msra.gmra.mrb[4].mxu0 %vm77_vm0, %v4294_v63 }
  0xf8   :  { %3892 = vmatmul.mubr.msk.f32.vlgmr.msra.gmra.mrb[4].mxu1 %vm77_vm0, %v4294_v63  ;;  %352 = vmatprep.mubr.f32.mxu0 %v4167_v3 }
  0xf9   :  { %441 = vmatprep.mubr.f32.mxu1 %v4167_v3 }
  0xfb   :  { %3889 = vmatmul.mubr.msk.f32.gmra.mrb[6].mxu0 %vm77_vm0, %v4311_v4 }
  0xfc   :  { %3893 = vmatmul.mubr.msk.f32.gmra.mrb[6].mxu1 %vm77_vm0, %v4311_v4  ;;  %358 = vmatprep.mubr.f32.mxu0 %v4167_v3 }
  0xfd   :  { %447 = vmatprep.mubr.f32.mxu1 %v4167_v3 }
  0xff   :  { %3890 = vmatmul.mubr.msk.f32.gmra.mrb[8].mxu0 %vm77_vm0, %v4322_v5 }
 0x100   :  { %3894 = vmatmul.mubr.msk.f32.gmra.mrb[8].mxu1 %vm77_vm0, %v4322_v5  ;;  %364 = vmatprep.mubr.f32.mxu0 %v4167_v3 }
 0x101   :  { %453 = vmatprep.mubr.f32.mxu1 %v4167_v3 }
 0x103   :  { %3891 = vmatmul.mubr.msk.f32.gmra.mrb[10].mxu0 %vm77_vm0, %v4333_v6 }
 0x104   :  { %3895 = vmatmul.mubr.msk.f32.gmra.mrb[10].mxu1 %vm77_vm0, %v4333_v6  ;;  %544 = vmatprep.mubr.f32.mxu0 %v4167_v3 }
 0x105   :  { %615 = vmatprep.mubr.f32.mxu1 %v4167_v3 }
 0x1ca   :  { %v348_v8 = vpop.f32.mrb[4].mxu0 }
 0x1cb   :  { %v437_v9 = vpop.f32.mrb[4].mxu1  ;;  %v350_v10 = vpop.f32.mrb[5].mxu0  ;;  %v349_v12 = vadd.f32 %v348_v8, %v4345_v7 }
 0x1cc   :  { %v439_v11 = vpop.f32.mrb[5].mxu1  ;;  %v438_v14 = vadd.f32 %v437_v9, %v4345_v7  ;;  %v351_v15 = vadd.f32 %v350_v10, %v4345_v7 }
 0x1cd   :  { %v440_v17 = vadd.f32 %v439_v11, %v4345_v7  ;;  %v460_v24 = vmax.f32 %v349_v12, 0.0 }
 0x1ce   :  { %v354_v16 = vpop.f32.mrb[6].mxu0  ;;  %v462_v27 = vmax.f32 %v438_v14, 0.0  ;;  %v461_v28 = vmax.f32 %v351_v15, 0.0  ;;  %v4372_v14 = vld [vmem:[%s5027_s1 + $0x30] sm:$0xff]  ;;  %v4380_v15 = vpop.permute.xlu0 %64 }
 0x1cf   :  { %v355_v18 = vadd.f32 %v354_v16, %v4348_v13  ;;  %v443_v19 = vpop.f32.mrb[6].mxu1  ;;  %v356_v20 = vpop.f32.mrb[7].mxu0  ;;  %v463_v32 = vmax.f32 %v440_v17, 0.0 }
 0x1d0   :  { %v444_v21 = vadd.f32 %v443_v19, %v4348_v13  ;;  %v357_v22 = vadd.f32 %v356_v20, %v4348_v13  ;;  %v445_v23 = vpop.f32.mrb[7].mxu1 }
 0x1d1   :  { %v464_v25 = vmax.f32 %v355_v18, 0.0  ;;  %v446_v26 = vadd.f32 %v445_v23, %v4348_v13 }
 0x1d2   :  { %v466_v29 = vmax.f32 %v444_v21, 0.0  ;;  %v465_v30 = vmax.f32 %v357_v22, 0.0  ;;  %v360_v31 = vpop.f32.mrb[8].mxu0 }
 0x1d3   :  { %v3992_v33 = vpack.c.bf16 %v464_v25, %v460_v24  ;;  %v467_v34 = vmax.f32 %v446_v26, 0.0  ;;  %v449_v35 = vpop.f32.mrb[8].mxu1  ;;  %v362_v36 = vpop.f32.mrb[9].mxu0  ;;  %v361_v42 = vadd.f32 %v360_v31, %v4357_v37 }
 0x1d4   :  { %v4000_v38 = vpack.c.bf16 %v466_v29, %v462_v27  ;;  %v3990_v39 = vpack.c.bf16 %v465_v30, %v461_v28  ;;  %v451_v40 = vpop.f32.mrb[9].mxu1  ;;  %v450_v44 = vadd.f32 %v449_v35, %v4357_v37  ;;  %v363_v45 = vadd.f32 %v362_v36, %v4357_v37 }
 0x1d5   :  { %v3998_v41 = vpack.c.bf16 %v467_v34, %v463_v32  ;;  %v452_v47 = vadd.f32 %v451_v40, %v4357_v37  ;;  %v468_v54 = vmax.f32 %v361_v42, 0.0 }
 0x1d6   :  { %v366_v46 = vpop.f32.mrb[10].mxu0  ;;  %3991 = vmatprep.subr.bf16.mxu0 %v3990_v39  ;;  %v470_v57 = vmax.f32 %v450_v44, 0.0  ;;  %v469_v58 = vmax.f32 %v363_v45, 0.0 }
 0x1d7   :  { %v367_v48 = vadd.f32 %v366_v46, %v4360_v43  ;;  %v455_v49 = vpop.f32.mrb[10].mxu1  ;;  %3999 = vmatprep.subr.bf16.mxu1 %v3998_v41  ;;  %v368_v50 = vpop.f32.mrb[11].mxu0  ;;  %3993 = vmatpush1.bf16.msra.mxu0 %v3992_v33  ;;  %v471_v61 = vmax.f32 %v452_v47, 0.0 }
 0x1d8   :  { %v456_v51 = vadd.f32 %v455_v49, %v4360_v43  ;;  %v369_v52 = vadd.f32 %v368_v50, %v4360_v43  ;;  %v457_v53 = vpop.f32.mrb[11].mxu1  ;;  %4001 = vmatpush1.bf16.msra.mxu1 %v4000_v38 }
 0x1d9   :  { %v472_v55 = vmax.f32 %v367_v48, 0.0  ;;  %v458_v56 = vadd.f32 %v457_v53, %v4360_v43 }
 0x1da   :  { %v474_v59 = vmax.f32 %v456_v51, 0.0  ;;  %v473_v60 = vmax.f32 %v369_v52, 0.0 }
 0x1db   :  { %v3996_v8 = vpack.c.bf16 %v472_v55, %v468_v54  ;;  %v475_v9 = vmax.f32 %v458_v56, 0.0 }
 0x1dc   :  { %v4004_v10 = vpack.c.bf16 %v474_v59, %v470_v57  ;;  %v3994_v11 = vpack.c.bf16 %v473_v60, %v469_v58 }
 0x1dd   :  { %v4002_v12 = vpack.c.bf16 %v475_v9, %v471_v61 }
 0x1de   :  { %3995 = vmatprep.subr.bf16.mxu0 %v3994_v11 }
 0x1df   :  { %4003 = vmatprep.subr.bf16.mxu1 %v4002_v12  ;;  %3997 = vmatpush1.bf16.msra.mxu0 %v3996_v8 }
 0x1e0   :  { %4005 = vmatpush1.bf16.msra.mxu1 %v4004_v10 }
 0x1e2   :  { %3896 = vmatmul.mubr.msk.f32.vlgmr.msra.gmra.mrb[12].mxu0 %vm476_vm1, %v4372_v14 }
 0x1e3   :  { %3897 = vmatmul.mubr.msk.f32.vlgmr.msra.gmra.mrb[12].mxu1 %vm476_vm1, %v4372_v14  ;;  %694 = vmatprep.mubr.f32.mxu0 %v4167_v3 }
 0x1e4   :  { %783 = vmatprep.mubr.f32.mxu1 %v4167_v3 }
 0x2b5   :  { %v546_v16 = vpop.f32.mrb[12].mxu0 }
 0x2b6   :  { %v547_v17 = vadd.f32 %v546_v16, %v4380_v15  ;;  %v617_v18 = vpop.f32.mrb[12].mxu1  ;;  %v548_v19 = vpop.f32.mrb[13].mxu0 }
 0x2b7   :  { %v618_v20 = vadd.f32 %v617_v18, %v4380_v15  ;;  %v549_v21 = vadd.f32 %v548_v19, %v4380_v15  ;;  %v619_v22 = vpop.f32.mrb[13].mxu1 }
 0x2b8   :  { %v622_v23 = vmul.f32 0.01, %v547_v17  ;;  %v620_v24 = vadd.f32 %v619_v22, %v4380_v15 }
 0x2b9   :  { %v624_v25 = vmul.f32 0.01, %v618_v20  ;;  %v623_v26 = vmul.f32 0.01, %v549_v21 }
 0x2ba   :  { %v625_v27 = vmul.f32 0.01, %v620_v24  ;;  %v4390_v29 = vsub.f32 %v4298_v1, %v622_v23 }
 0x2bb   :  { %v4387_v28 = vsub.f32 %v4289_v62, %v623_v26  ;;  %v4396_v31 = vsub.f32 %v4301_v2, %v624_v25 }
 0x2bc   :  { %v4393_v30 = vsub.f32 %v4296_v0, %v625_v27 }
 0x2bd   :  { %630 = vmatprep.subr.mxu0 %v4387_v28 }
 0x2be   :  { %719 = vmatprep.subr.mxu1 %v4393_v30  ;;  %631 = vmatpush1.msra.mxu0 %v4390_v29 }
 0x2bf   :  { %720 = vmatpush1.msra.mxu1 %v4396_v31  ;;  %3898 = vmatmul.mubr.msk.f32.vlgmr.msra.gmra.mrb[14].mxu0 %vm77_vm0, %v4294_v63 }
 0x2c0   :  { %3902 = vmatmul.mubr.msk.f32.vlgmr.msra.gmra.mrb[14].mxu1 %vm77_vm0, %v4294_v63  ;;  %700 = vmatprep.mubr.f32.mxu0 %v4167_v3 }
 0x2c1   :  { %789 = vmatprep.mubr.f32.mxu1 %v4167_v3 }
 0x2c3   :  { %3899 = vmatmul.mubr.msk.f32.gmra.mrb[16].mxu0 %vm77_vm0, %v4311_v4 }
 0x2c4   :  { %3903 = vmatmul.mubr.msk.f32.gmra.mrb[16].mxu1 %vm77_vm0, %v4311_v4  ;;  %706 = vmatprep.mubr.f32.mxu0 %v4167_v3 }
 0x2c5   :  { %795 = vmatprep.mubr.f32.mxu1 %v4167_v3 }
 0x2c7   :  { %3900 = vmatmul.mubr.msk.f32.gmra.mrb[18].mxu0 %vm77_vm0, %v4322_v5 }
 0x2c8   :  { %3904 = vmatmul.mubr.msk.f32.gmra.mrb[18].mxu1 %vm77_vm0, %v4322_v5  ;;  %712 = vmatprep.mubr.f32.mxu0 %v4167_v3 }
 0x2c9   :  { %801 = vmatprep.mubr.f32.mxu1 %v4167_v3 }
 0x2cb   :  { %3901 = vmatmul.mubr.msk.f32.gmra.mrb[20].mxu0 %vm77_vm0, %v4333_v6 }
 0x2cc   :  { %3905 = vmatmul.mubr.msk.f32.gmra.mrb[20].mxu1 %vm77_vm0, %v4333_v6  ;;  %888 = vmatprep.mubr.f32.mxu0 %v4167_v3 }
 0x2cd   :  { %959 = vmatprep.mubr.f32.mxu1 %v4167_v3 }
 0x392   :  { %v696_v62 = vpop.f32.mrb[14].mxu0 }
 0x393   :  { %v785_v0 = vpop.f32.mrb[14].mxu1  ;;  %v698_v1 = vpop.f32.mrb[15].mxu0  ;;  %v697_v32 = vadd.f32 %v696_v62, %v4345_v7 }
 0x394   :  { %v787_v2 = vpop.f32.mrb[15].mxu1  ;;  %v786_v33 = vadd.f32 %v785_v0, %v4345_v7  ;;  %v699_v34 = vadd.f32 %v698_v1, %v4345_v7 }
 0x395   :  { %v788_v36 = vadd.f32 %v787_v2, %v4345_v7  ;;  %v808_v45 = vmax.f32 %v697_v32, 0.0 }
 0x396   :  { %v702_v35 = vpop.f32.mrb[16].mxu0  ;;  %v810_v48 = vmax.f32 %v786_v33, 0.0  ;;  %v809_v49 = vmax.f32 %v699_v34, 0.0 }
 0x397   :  { %v703_v38 = vadd.f32 %v702_v35, %v4348_v13  ;;  %v791_v39 = vpop.f32.mrb[16].mxu1  ;;  %v704_v40 = vpop.f32.mrb[17].mxu0  ;;  %v811_v53 = vmax.f32 %v788_v36, 0.0 }
 0x398   :  { %v792_v41 = vadd.f32 %v791_v39, %v4348_v13  ;;  %v705_v42 = vadd.f32 %v704_v40, %v4348_v13  ;;  %v793_v44 = vpop.f32.mrb[17].mxu1 }
 0x399   :  { %v812_v46 = vmax.f32 %v703_v38, 0.0  ;;  %v794_v47 = vadd.f32 %v793_v44, %v4348_v13 }
 0x39a   :  { %v814_v50 = vmax.f32 %v792_v41, 0.0  ;;  %v813_v51 = vmax.f32 %v705_v42, 0.0  ;;  %v708_v52 = vpop.f32.mrb[18].mxu0 }
 0x39b   :  { %v4008_v54 = vpack.c.bf16 %v812_v46, %v808_v45  ;;  %v815_v55 = vmax.f32 %v794_v47, 0.0  ;;  %v797_v56 = vpop.f32.mrb[18].mxu1  ;;  %v710_v57 = vpop.f32.mrb[19].mxu0  ;;  %v709_v8 = vadd.f32 %v708_v52, %v4357_v37 }
 0x39c   :  { %v4016_v58 = vpack.c.bf16 %v814_v50, %v810_v48  ;;  %v4006_v59 = vpack.c.bf16 %v813_v51, %v809_v49  ;;  %v799_v60 = vpop.f32.mrb[19].mxu1  ;;  %v798_v9 = vadd.f32 %v797_v56, %v4357_v37  ;;  %v711_v10 = vadd.f32 %v710_v57, %v4357_v37 }
 0x39d   :  { %v4014_v61 = vpack.c.bf16 %v815_v55, %v811_v53  ;;  %v800_v12 = vadd.f32 %v799_v60, %v4357_v37  ;;  %v816_v22 = vmax.f32 %v709_v8, 0.0 }
 0x39e   :  { %v714_v11 = vpop.f32.mrb[20].mxu0  ;;  %4007 = vmatprep.subr.bf16.mxu0 %v4006_v59  ;;  %v818_v25 = vmax.f32 %v798_v9, 0.0  ;;  %v817_v26 = vmax.f32 %v711_v10, 0.0 }
 0x39f   :  { %v715_v16 = vadd.f32 %v714_v11, %v4360_v43  ;;  %v803_v17 = vpop.f32.mrb[20].mxu1  ;;  %4015 = vmatprep.subr.bf16.mxu1 %v4014_v61  ;;  %v716_v18 = vpop.f32.mrb[21].mxu0  ;;  %4009 = vmatpush1.bf16.msra.mxu0 %v4008_v54  ;;  %v819_v0 = vmax.f32 %v800_v12, 0.0 }
 0x3a0   :  { %v804_v19 = vadd.f32 %v803_v17, %v4360_v43  ;;  %v717_v20 = vadd.f32 %v716_v18, %v4360_v43  ;;  %v805_v21 = vpop.f32.mrb[21].mxu1  ;;  %4017 = vmatpush1.bf16.msra.mxu1 %v4016_v58 }
 0x3a1   :  { %v820_v23 = vmax.f32 %v715_v16, 0.0  ;;  %v806_v24 = vadd.f32 %v805_v21, %v4360_v43 }
 0x3a2   :  { %v822_v27 = vmax.f32 %v804_v19, 0.0  ;;  %v821_v62 = vmax.f32 %v717_v20, 0.0 }
 0x3a3   :  { %v4012_v1 = vpack.c.bf16 %v820_v23, %v816_v22  ;;  %v823_v2 = vmax.f32 %v806_v24, 0.0 }
 0x3a4   :  { %v4020_v32 = vpack.c.bf16 %v822_v27, %v818_v25  ;;  %v4010_v33 = vpack.c.bf16 %v821_v62, %v817_v26 }
 0x3a5   :  { %v4018_v34 = vpack.c.bf16 %v823_v2, %v819_v0 }
 0x3a6   :  { %4011 = vmatprep.subr.bf16.mxu0 %v4010_v33 }
 0x3a7   :  { %4019 = vmatprep.subr.bf16.mxu1 %v4018_v34  ;;  %4013 = vmatpush1.bf16.msra.mxu0 %v4012_v1 }
 0x3a8   :  { %4021 = vmatpush1.bf16.msra.mxu1 %v4020_v32 }
 0x3aa   :  { %3906 = vmatmul.mubr.msk.f32.vlgmr.msra.gmra.mrb[22].mxu0 %vm476_vm1, %v4372_v14 }
 0x3ab   :  { %3907 = vmatmul.mubr.msk.f32.vlgmr.msra.gmra.mrb[22].mxu1 %vm476_vm1, %v4372_v14  ;;  %1038 = vmatprep.mubr.f32.mxu0 %v4167_v3 }
 0x3ac   :  { %1127 = vmatprep.mubr.f32.mxu1 %v4167_v3 }
 0x47d   :  { %v890_v35 = vpop.f32.mrb[22].mxu0 }
 0x47e   :  { %v891_v36 = vadd.f32 %v890_v35, %v4380_v15  ;;  %v961_v38 = vpop.f32.mrb[22].mxu1  ;;  %v892_v39 = vpop.f32.mrb[23].mxu0 }
 0x47f   :  { %v962_v40 = vadd.f32 %v961_v38, %v4380_v15  ;;  %v893_v41 = vadd.f32 %v892_v39, %v4380_v15  ;;  %v963_v42 = vpop.f32.mrb[23].mxu1 }
 0x480   :  { %v966_v44 = vmul.f32 0.011111111, %v891_v36  ;;  %v964_v45 = vadd.f32 %v963_v42, %v4380_v15 }
 0x481   :  { %v968_v46 = vmul.f32 0.011111111, %v962_v40  ;;  %v967_v47 = vmul.f32 0.011111111, %v893_v41 }
 0x482   :  { %v969_v48 = vmul.f32 0.011111111, %v964_v45  ;;  %v4456_v50 = vsub.f32 %v4390_v29, %v966_v44 }
 0x483   :  { %v4453_v49 = vsub.f32 %v4387_v28, %v967_v47  ;;  %v4462_v52 = vsub.f32 %v4396_v31, %v968_v46 }
 0x484   :  { %v4459_v51 = vsub.f32 %v4393_v30, %v969_v48 }
 0x485   :  { %974 = vmatprep.subr.mxu0 %v4453_v49 }
 0x486   :  { %1063 = vmatprep.subr.mxu1 %v4459_v51  ;;  %975 = vmatpush1.msra.mxu0 %v4456_v50 }
 0x487   :  { %1064 = vmatpush1.msra.mxu1 %v4462_v52  ;;  %3908 = vmatmul.mubr.msk.f32.vlgmr.msra.gmra.mrb[24].mxu0 %vm77_vm0, %v4294_v63 }
 0x488   :  { %3912 = vmatmul.mubr.msk.f32.vlgmr.msra.gmra.mrb[24].mxu1 %vm77_vm0, %v4294_v63  ;;  %1044 = vmatprep.mubr.f32.mxu0 %v4167_v3 }
 0x489   :  { %1133 = vmatprep.mubr.f32.mxu1 %v4167_v3 }
 0x48b   :  { %3909 = vmatmul.mubr.msk.f32.gmra.mrb[26].mxu0 %vm77_vm0, %v4311_v4 }
 0x48c   :  { %3913 = vmatmul.mubr.msk.f32.gmra.mrb[26].mxu1 %vm77_vm0, %v4311_v4  ;;  %1050 = vmatprep.mubr.f32.mxu0 %v4167_v3 }
 0x48d   :  { %1139 = vmatprep.mubr.f32.mxu1 %v4167_v3 }
 0x48f   :  { %3910 = vmatmul.mubr.msk.f32.gmra.mrb[28].mxu0 %vm77_vm0, %v4322_v5 }
 0x490   :  { %3914 = vmatmul.mubr.msk.f32.gmra.mrb[28].mxu1 %vm77_vm0, %v4322_v5  ;;  %1056 = vmatprep.mubr.f32.mxu0 %v4167_v3 }
 0x491   :  { %1145 = vmatprep.mubr.f32.mxu1 %v4167_v3 }
 0x493   :  { %3911 = vmatmul.mubr.msk.f32.gmra.mrb[30].mxu0 %vm77_vm0, %v4333_v6 }
 0x494   :  { %3915 = vmatmul.mubr.msk.f32.gmra.mrb[30].mxu1 %vm77_vm0, %v4333_v6  ;;  %1232 = vmatprep.mubr.f32.mxu0 %v4167_v3 }
 0x495   :  { %1303 = vmatprep.mubr.f32.mxu1 %v4167_v3 }
 0x55a   :  { %v1040_v28 = vpop.f32.mrb[24].mxu0 }
 0x55b   :  { %v1129_v29 = vpop.f32.mrb[24].mxu1  ;;  %v1042_v30 = vpop.f32.mrb[25].mxu0  ;;  %v1041_v53 = vadd.f32 %v1040_v28, %v4345_v7 }
 0x55c   :  { %v1131_v31 = vpop.f32.mrb[25].mxu1  ;;  %v1130_v54 = vadd.f32 %v1129_v29, %v4345_v7  ;;  %v1043_v55 = vadd.f32 %v1042_v30, %v4345_v7 }
 0x55d   :  { %v1132_v57 = vadd.f32 %v1131_v31, %v4345_v7  ;;  %v1152_v10 = vmax.f32 %v1041_v53, 0.0 }
 0x55e   :  { %v1046_v56 = vpop.f32.mrb[26].mxu0  ;;  %v1154_v16 = vmax.f32 %v1130_v54, 0.0  ;;  %v1153_v17 = vmax.f32 %v1043_v55, 0.0 }
 0x55f   :  { %v1047_v58 = vadd.f32 %v1046_v56, %v4348_v13  ;;  %v1135_v59 = vpop.f32.mrb[26].mxu1  ;;  %v1048_v60 = vpop.f32.mrb[27].mxu0  ;;  %v1155_v21 = vmax.f32 %v1132_v57, 0.0 }
 0x560   :  { %v1136_v61 = vadd.f32 %v1135_v59, %v4348_v13  ;;  %v1049_v8 = vadd.f32 %v1048_v60, %v4348_v13  ;;  %v1137_v9 = vpop.f32.mrb[27].mxu1 }
 0x561   :  { %v1156_v11 = vmax.f32 %v1047_v58, 0.0  ;;  %v1138_v12 = vadd.f32 %v1137_v9, %v4348_v13 }
 0x562   :  { %v1158_v18 = vmax.f32 %v1136_v61, 0.0  ;;  %v1157_v19 = vmax.f32 %v1049_v8, 0.0  ;;  %v1052_v20 = vpop.f32.mrb[28].mxu0 }
 0x563   :  { %v4024_v22 = vpack.c.bf16 %v1156_v11, %v1152_v10  ;;  %v1159_v23 = vmax.f32 %v1138_v12, 0.0  ;;  %v1141_v24 = vpop.f32.mrb[28].mxu1  ;;  %v1054_v25 = vpop.f32.mrb[29].mxu0  ;;  %v1053_v1 = vadd.f32 %v1052_v20, %v4357_v37 }
 0x564   :  { %v4032_v26 = vpack.c.bf16 %v1158_v18, %v1154_v16  ;;  %v4022_v27 = vpack.c.bf16 %v1157_v19, %v1153_v17  ;;  %v1143_v62 = vpop.f32.mrb[29].mxu1  ;;  %v1142_v2 = vadd.f32 %v1141_v24, %v4357_v37  ;;  %v1055_v32 = vadd.f32 %v1054_v25, %v4357_v37 }
 0x565   :  { %v4030_v0 = vpack.c.bf16 %v1159_v23, %v1155_v21  ;;  %v1144_v34 = vadd.f32 %v1143_v62, %v4357_v37  ;;  %v1160_v42 = vmax.f32 %v1053_v1, 0.0 }
 0x566   :  { %v1058_v33 = vpop.f32.mrb[30].mxu0  ;;  %4023 = vmatprep.subr.bf16.mxu0 %v4022_v27  ;;  %v1162_v46 = vmax.f32 %v1142_v2, 0.0  ;;  %v1161_v47 = vmax.f32 %v1055_v32, 0.0 }
 0x567   :  { %v1059_v35 = vadd.f32 %v1058_v33, %v4360_v43  ;;  %v1147_v36 = vpop.f32.mrb[30].mxu1  ;;  %4031 = vmatprep.subr.bf16.mxu1 %v4030_v0  ;;  %v1060_v38 = vpop.f32.mrb[31].mxu0  ;;  %4025 = vmatpush1.bf16.msra.mxu0 %v4024_v22  ;;  %v1163_v29 = vmax.f32 %v1144_v34, 0.0 }
 0x568   :  { %v1148_v39 = vadd.f32 %v1147_v36, %v4360_v43  ;;  %v1061_v40 = vadd.f32 %v1060_v38, %v4360_v43  ;;  %v1149_v41 = vpop.f32.mrb[31].mxu1  ;;  %4033 = vmatpush1.bf16.msra.mxu1 %v4032_v26 }
 0x569   :  { %v1164_v44 = vmax.f32 %v1059_v35, 0.0  ;;  %v1150_v45 = vadd.f32 %v1149_v41, %v4360_v43 }
 0x56a   :  { %v1166_v48 = vmax.f32 %v1148_v39, 0.0  ;;  %v1165_v28 = vmax.f32 %v1061_v40, 0.0 }
 0x56b   :  { %v4028_v30 = vpack.c.bf16 %v1164_v44, %v1160_v42  ;;  %v1167_v31 = vmax.f32 %v1150_v45, 0.0 }
 0x56c   :  { %v4036_v53 = vpack.c.bf16 %v1166_v48, %v1162_v46  ;;  %v4026_v54 = vpack.c.bf16 %v1165_v28, %v1161_v47 }
 0x56d   :  { %v4034_v55 = vpack.c.bf16 %v1167_v31, %v1163_v29 }
 0x56e   :  { %4027 = vmatprep.subr.bf16.mxu0 %v4026_v54 }
 0x56f   :  { %4035 = vmatprep.subr.bf16.mxu1 %v4034_v55  ;;  %4029 = vmatpush1.bf16.msra.mxu0 %v4028_v30 }
 0x570   :  { %4037 = vmatpush1.bf16.msra.mxu1 %v4036_v53 }
 0x572   :  { %3916 = vmatmul.mubr.msk.f32.vlgmr.msra.gmra.mrb[32].mxu0 %vm476_vm1, %v4372_v14 }
 0x573   :  { %3917 = vmatmul.mubr.msk.f32.vlgmr.msra.gmra.mrb[32].mxu1 %vm476_vm1, %v4372_v14  ;;  %1382 = vmatprep.mubr.f32.mxu0 %v4167_v3 }
 0x574   :  { %1471 = vmatprep.mubr.f32.mxu1 %v4167_v3 }
 0x645   :  { %v1234_v56 = vpop.f32.mrb[32].mxu0 }
 0x646   :  { %v1235_v57 = vadd.f32 %v1234_v56, %v4380_v15  ;;  %v1305_v58 = vpop.f32.mrb[32].mxu1  ;;  %v1236_v59 = vpop.f32.mrb[33].mxu0 }
 0x647   :  { %v1306_v60 = vadd.f32 %v1305_v58, %v4380_v15  ;;  %v1237_v61 = vadd.f32 %v1236_v59, %v4380_v15  ;;  %v1307_v8 = vpop.f32.mrb[33].mxu1 }
 0x648   :  { %v1310_v9 = vmul.f32 0.0125, %v1235_v57  ;;  %v1308_v10 = vadd.f32 %v1307_v8, %v4380_v15 }
 0x649   :  { %v1312_v11 = vmul.f32 0.0125, %v1306_v60  ;;  %v1311_v12 = vmul.f32 0.0125, %v1237_v61 }
 0x64a   :  { %v1313_v16 = vmul.f32 0.0125, %v1308_v10  ;;  %v4522_v18 = vsub.f32 %v4456_v50, %v1310_v9 }
 0x64b   :  { %v4519_v17 = vsub.f32 %v4453_v49, %v1311_v12  ;;  %v4528_v20 = vsub.f32 %v4462_v52, %v1312_v11 }
 0x64c   :  { %v4525_v19 = vsub.f32 %v4459_v51, %v1313_v16 }
 0x64d   :  { %1318 = vmatprep.subr.mxu0 %v4519_v17 }
 0x64e   :  { %1407 = vmatprep.subr.mxu1 %v4525_v19  ;;  %1319 = vmatpush1.msra.mxu0 %v4522_v18 }
 0x64f   :  { %1408 = vmatpush1.msra.mxu1 %v4528_v20  ;;  %3918 = vmatmul.mubr.msk.f32.vlgmr.msra.gmra.mrb[34].mxu0 %vm77_vm0, %v4294_v63 }
 0x650   :  { %3922 = vmatmul.mubr.msk.f32.vlgmr.msra.gmra.mrb[34].mxu1 %vm77_vm0, %v4294_v63  ;;  %1388 = vmatprep.mubr.f32.mxu0 %v4167_v3 }
 0x651   :  { %1477 = vmatprep.mubr.f32.mxu1 %v4167_v3 }
 0x653   :  { %3919 = vmatmul.mubr.msk.f32.gmra.mrb[36].mxu0 %vm77_vm0, %v4311_v4 }
 0x654   :  { %3923 = vmatmul.mubr.msk.f32.gmra.mrb[36].mxu1 %vm77_vm0, %v4311_v4  ;;  %1394 = vmatprep.mubr.f32.mxu0 %v4167_v3 }
 0x655   :  { %1483 = vmatprep.mubr.f32.mxu1 %v4167_v3 }
 0x657   :  { %3920 = vmatmul.mubr.msk.f32.gmra.mrb[38].mxu0 %vm77_vm0, %v4322_v5 }
 0x658   :  { %3924 = vmatmul.mubr.msk.f32.gmra.mrb[38].mxu1 %vm77_vm0, %v4322_v5  ;;  %1400 = vmatprep.mubr.f32.mxu0 %v4167_v3 }
 0x659   :  { %1489 = vmatprep.mubr.f32.mxu1 %v4167_v3 }
 0x65b   :  { %3921 = vmatmul.mubr.msk.f32.gmra.mrb[40].mxu0 %vm77_vm0, %v4333_v6 }
 0x65c   :  { %3925 = vmatmul.mubr.msk.f32.gmra.mrb[40].mxu1 %vm77_vm0, %v4333_v6  ;;  %1576 = vmatprep.mubr.f32.mxu0 %v4167_v3 }
 0x65d   :  { %1647 = vmatprep.mubr.f32.mxu1 %v4167_v3 }
 0x722   :  { %v1384_v49 = vpop.f32.mrb[34].mxu0 }
 0x723   :  { %v1473_v50 = vpop.f32.mrb[34].mxu1  ;;  %v1386_v51 = vpop.f32.mrb[35].mxu0  ;;  %v1385_v21 = vadd.f32 %v1384_v49, %v4345_v7 }
 0x724   :  { %v1475_v52 = vpop.f32.mrb[35].mxu1  ;;  %v1474_v22 = vadd.f32 %v1473_v50, %v4345_v7  ;;  %v1387_v23 = vadd.f32 %v1386_v51, %v4345_v7 }
 0x725   :  { %v1476_v25 = vadd.f32 %v1475_v52, %v4345_v7  ;;  %v1496_v32 = vmax.f32 %v1385_v21, 0.0 }
 0x726   :  { %v1390_v24 = vpop.f32.mrb[36].mxu0  ;;  %v1498_v35 = vmax.f32 %v1474_v22, 0.0  ;;  %v1497_v36 = vmax.f32 %v1387_v23, 0.0 }
 0x727   :  { %v1391_v26 = vadd.f32 %v1390_v24, %v4348_v13  ;;  %v1479_v27 = vpop.f32.mrb[36].mxu1  ;;  %v1392_v62 = vpop.f32.mrb[37].mxu0  ;;  %v1499_v41 = vmax.f32 %v1476_v25, 0.0 }
 0x728   :  { %v1480_v0 = vadd.f32 %v1479_v27, %v4348_v13  ;;  %v1393_v1 = vadd.f32 %v1392_v62, %v4348_v13  ;;  %v1481_v2 = vpop.f32.mrb[37].mxu1 }
 0x729   :  { %v1500_v33 = vmax.f32 %v1391_v26, 0.0  ;;  %v1482_v34 = vadd.f32 %v1481_v2, %v4348_v13 }
 0x72a   :  { %v1502_v38 = vmax.f32 %v1480_v0, 0.0  ;;  %v1501_v39 = vmax.f32 %v1393_v1, 0.0  ;;  %v1396_v40 = vpop.f32.mrb[38].mxu0 }
 0x72b   :  { %v4040_v42 = vpack.c.bf16 %v1500_v33, %v1496_v32  ;;  %v1503_v44 = vmax.f32 %v1482_v34, 0.0  ;;  %v1485_v45 = vpop.f32.mrb[38].mxu1  ;;  %v1398_v46 = vpop.f32.mrb[39].mxu0  ;;  %v1397_v30 = vadd.f32 %v1396_v40, %v4357_v37 }
 0x72c   :  { %v4048_v47 = vpack.c.bf16 %v1502_v38, %v1498_v35  ;;  %v4038_v48 = vpack.c.bf16 %v1501_v39, %v1497_v36  ;;  %v1487_v28 = vpop.f32.mrb[39].mxu1  ;;  %v1486_v31 = vadd.f32 %v1485_v45, %v4357_v37  ;;  %v1399_v53 = vadd.f32 %v1398_v46, %v4357_v37 }
 0x72d   :  { %v4046_v29 = vpack.c.bf16 %v1503_v44, %v1499_v41  ;;  %v1488_v55 = vadd.f32 %v1487_v28, %v4357_v37  ;;  %v1504_v8 = vmax.f32 %v1397_v30, 0.0 }
 0x72e   :  { %v1402_v54 = vpop.f32.mrb[40].mxu0  ;;  %4039 = vmatprep.subr.bf16.mxu0 %v4038_v48  ;;  %v1506_v11 = vmax.f32 %v1486_v31, 0.0  ;;  %v1505_v12 = vmax.f32 %v1399_v53, 0.0 }
 0x72f   :  { %v1403_v56 = vadd.f32 %v1402_v54, %v4360_v43  ;;  %v1491_v57 = vpop.f32.mrb[40].mxu1  ;;  %4047 = vmatprep.subr.bf16.mxu1 %v4046_v29  ;;  %v1404_v58 = vpop.f32.mrb[41].mxu0  ;;  %4041 = vmatpush1.bf16.msra.mxu0 %v4040_v42  ;;  %v1507_v50 = vmax.f32 %v1488_v55, 0.0 }
 0x730   :  { %v1492_v59 = vadd.f32 %v1491_v57, %v4360_v43  ;;  %v1405_v60 = vadd.f32 %v1404_v58, %v4360_v43  ;;  %v1493_v61 = vpop.f32.mrb[41].mxu1  ;;  %4049 = vmatpush1.bf16.msra.mxu1 %v4048_v47 }
 0x731   :  { %v1508_v9 = vmax.f32 %v1403_v56, 0.0  ;;  %v1494_v10 = vadd.f32 %v1493_v61, %v4360_v43 }
 0x732   :  { %v1510_v16 = vmax.f32 %v1492_v59, 0.0  ;;  %v1509_v49 = vmax.f32 %v1405_v60, 0.0 }
 0x733   :  { %v4044_v51 = vpack.c.bf16 %v1508_v9, %v1504_v8  ;;  %v1511_v52 = vmax.f32 %v1494_v10, 0.0 }
 0x734   :  { %v4052_v21 = vpack.c.bf16 %v1510_v16, %v1506_v11  ;;  %v4042_v22 = vpack.c.bf16 %v1509_v49, %v1505_v12 }
 0x735   :  { %v4050_v23 = vpack.c.bf16 %v1511_v52, %v1507_v50 }
 0x736   :  { %4043 = vmatprep.subr.bf16.mxu0 %v4042_v22 }
 0x737   :  { %4051 = vmatprep.subr.bf16.mxu1 %v4050_v23  ;;  %4045 = vmatpush1.bf16.msra.mxu0 %v4044_v51 }
 0x738   :  { %4053 = vmatpush1.bf16.msra.mxu1 %v4052_v21 }
 0x73a   :  { %3926 = vmatmul.mubr.msk.f32.vlgmr.msra.gmra.mrb[42].mxu0 %vm476_vm1, %v4372_v14 }
 0x73b   :  { %3927 = vmatmul.mubr.msk.f32.vlgmr.msra.gmra.mrb[42].mxu1 %vm476_vm1, %v4372_v14  ;;  %1726 = vmatprep.mubr.f32.mxu0 %v4167_v3 }
 0x73c   :  { %1815 = vmatprep.mubr.f32.mxu1 %v4167_v3 }
 0x80d   :  { %v1578_v24 = vpop.f32.mrb[42].mxu0 }
 0x80e   :  { %v1579_v25 = vadd.f32 %v1578_v24, %v4380_v15  ;;  %v1649_v26 = vpop.f32.mrb[42].mxu1  ;;  %v1580_v27 = vpop.f32.mrb[43].mxu0 }
 0x80f   :  { %v1650_v62 = vadd.f32 %v1649_v26, %v4380_v15  ;;  %v1581_v0 = vadd.f32 %v1580_v27, %v4380_v15  ;;  %v1651_v1 = vpop.f32.mrb[43].mxu1 }
 0x810   :  { %v1654_v2 = vmul.f32 0.014285714, %v1579_v25  ;;  %v1652_v32 = vadd.f32 %v1651_v1, %v4380_v15 }
 0x811   :  { %v1656_v33 = vmul.f32 0.014285714, %v1650_v62  ;;  %v1655_v34 = vmul.f32 0.014285714, %v1581_v0 }
 0x812   :  { %v1657_v35 = vmul.f32 0.014285714, %v1652_v32  ;;  %v4588_v38 = vsub.f32 %v4522_v18, %v1654_v2 }
 0x813   :  { %v4585_v36 = vsub.f32 %v4519_v17, %v1655_v34  ;;  %v4594_v40 = vsub.f32 %v4528_v20, %v1656_v33 }
 0x814   :  { %v4591_v39 = vsub.f32 %v4525_v19, %v1657_v35 }
 0x815   :  { %1662 = vmatprep.subr.mxu0 %v4585_v36 }
 0x816   :  { %1751 = vmatprep.subr.mxu1 %v4591_v39  ;;  %1663 = vmatpush1.msra.mxu0 %v4588_v38 }
 0x817   :  { %1752 = vmatpush1.msra.mxu1 %v4594_v40  ;;  %3928 = vmatmul.mubr.msk.f32.vlgmr.msra.gmra.mrb[44].mxu0 %vm77_vm0, %v4294_v63 }
 0x818   :  { %3932 = vmatmul.mubr.msk.f32.vlgmr.msra.gmra.mrb[44].mxu1 %vm77_vm0, %v4294_v63  ;;  %1732 = vmatprep.mubr.f32.mxu0 %v4167_v3 }
 0x819   :  { %1821 = vmatprep.mubr.f32.mxu1 %v4167_v3 }
 0x81b   :  { %3929 = vmatmul.mubr.msk.f32.gmra.mrb[46].mxu0 %vm77_vm0, %v4311_v4 }
 0x81c   :  { %3933 = vmatmul.mubr.msk.f32.gmra.mrb[46].mxu1 %vm77_vm0, %v4311_v4  ;;  %1738 = vmatprep.mubr.f32.mxu0 %v4167_v3 }
 0x81d   :  { %1827 = vmatprep.mubr.f32.mxu1 %v4167_v3 }
 0x81f   :  { %3930 = vmatmul.mubr.msk.f32.gmra.mrb[48].mxu0 %vm77_vm0, %v4322_v5 }
 0x820   :  { %3934 = vmatmul.mubr.msk.f32.gmra.mrb[48].mxu1 %vm77_vm0, %v4322_v5  ;;  %1744 = vmatprep.mubr.f32.mxu0 %v4167_v3 }
 0x821   :  { %1833 = vmatprep.mubr.f32.mxu1 %v4167_v3 }
 0x823   :  { %3931 = vmatmul.mubr.msk.f32.gmra.mrb[50].mxu0 %vm77_vm0, %v4333_v6 }
 0x824   :  { %3935 = vmatmul.mubr.msk.f32.gmra.mrb[50].mxu1 %vm77_vm0, %v4333_v6  ;;  %1920 = vmatprep.mubr.f32.mxu0 %v4167_v3 }
 0x825   :  { %1991 = vmatprep.mubr.f32.mxu1 %v4167_v3 }
 0x8ea   :  { %v1728_v63 = vpop.f32.mrb[44].mxu0 }
 0x8eb   :  { %v1817_v4 = vpop.f32.mrb[44].mxu1  ;;  %v1730_v17 = vpop.f32.mrb[45].mxu0  ;;  %v1729_v5 = vadd.f32 %v1728_v63, %v4345_v7 }
 0x8ec   :  { %v1819_v18 = vpop.f32.mrb[45].mxu1  ;;  %v1818_v19 = vadd.f32 %v1817_v4, %v4345_v7  ;;  %v1731_v20 = vadd.f32 %v1730_v17, %v4345_v7 }
 0x8ed   :  { %v1820_v42 = vadd.f32 %v1819_v18, %v4345_v7  ;;  %v1840_v28 = vmax.f32 %v1729_v5, 0.0 }
 0x8ee   :  { %v1734_v41 = vpop.f32.mrb[46].mxu0  ;;  %v1842_v31 = vmax.f32 %v1818_v19, 0.0  ;;  %v1841_v53 = vmax.f32 %v1731_v20, 0.0 }
 0x8ef   :  { %v1735_v44 = vadd.f32 %v1734_v41, %v4348_v13  ;;  %v1823_v6 = vpop.f32.mrb[46].mxu1  ;;  %v1736_v45 = vpop.f32.mrb[47].mxu0  ;;  %v1843_v57 = vmax.f32 %v1820_v42, 0.0 }
 0x8f0   :  { %v1824_v46 = vadd.f32 %v1823_v6, %v4348_v13  ;;  %v1737_v47 = vadd.f32 %v1736_v45, %v4348_v13  ;;  %v1825_v48 = vpop.f32.mrb[47].mxu1 }
 0x8f1   :  { %v1844_v29 = vmax.f32 %v1735_v44, 0.0  ;;  %v1826_v30 = vadd.f32 %v1825_v48, %v4348_v13 }
 0x8f2   :  { %v1846_v54 = vmax.f32 %v1824_v46, 0.0  ;;  %v1845_v55 = vmax.f32 %v1737_v47, 0.0  ;;  %v1740_v56 = vpop.f32.mrb[48].mxu0 }
 0x8f3   :  { %v4056_v58 = vpack.c.bf16 %v1844_v29, %v1840_v28  ;;  %v1847_v59 = vmax.f32 %v1826_v30, 0.0  ;;  %v1829_v60 = vpop.f32.mrb[48].mxu1  ;;  %v1742_v61 = vpop.f32.mrb[49].mxu0  ;;  %v1741_v12 = vadd.f32 %v1740_v56, %v4357_v37 }
 0x8f4   :  { %v4064_v8 = vpack.c.bf16 %v1846_v54, %v1842_v31  ;;  %v4054_v9 = vpack.c.bf16 %v1845_v55, %v1841_v53  ;;  %v1831_v10 = vpop.f32.mrb[49].mxu1  ;;  %v1830_v16 = vadd.f32 %v1829_v60, %v4357_v37  ;;  %v1743_v49 = vadd.f32 %v1742_v61, %v4357_v37 }
 0x8f5   :  { %v4062_v11 = vpack.c.bf16 %v1847_v59, %v1843_v57  ;;  %v1832_v51 = vadd.f32 %v1831_v10, %v4357_v37  ;;  %v1848_v26 = vmax.f32 %v1741_v12, 0.0 }
 0x8f6   :  { %v1746_v50 = vpop.f32.mrb[50].mxu0  ;;  %4055 = vmatprep.subr.bf16.mxu0 %v4054_v9  ;;  %v1850_v0 = vmax.f32 %v1830_v16, 0.0  ;;  %v1849_v1 = vmax.f32 %v1743_v49, 0.0 }
 0x8f7   :  { %v1747_v52 = vadd.f32 %v1746_v50, %v4360_v43  ;;  %v1835_v21 = vpop.f32.mrb[50].mxu1  ;;  %4063 = vmatprep.subr.bf16.mxu1 %v4062_v11  ;;  %v1748_v22 = vpop.f32.mrb[51].mxu0  ;;  %4057 = vmatpush1.bf16.msra.mxu0 %v4056_v58  ;;  %v1851_v33 = vmax.f32 %v1832_v51, 0.0 }
 0x8f8   :  { %v1836_v23 = vadd.f32 %v1835_v21, %v4360_v43  ;;  %v1749_v24 = vadd.f32 %v1748_v22, %v4360_v43  ;;  %v1837_v25 = vpop.f32.mrb[51].mxu1  ;;  %4065 = vmatpush1.bf16.msra.mxu1 %v4064_v8 }
 0x8f9   :  { %v1852_v27 = vmax.f32 %v1747_v52, 0.0  ;;  %v1838_v62 = vadd.f32 %v1837_v25, %v4360_v43 }
 0x8fa   :  { %v1854_v2 = vmax.f32 %v1836_v23, 0.0  ;;  %v1853_v32 = vmax.f32 %v1749_v24, 0.0 }
 0x8fb   :  { %v4060_v34 = vpack.c.bf16 %v1852_v27, %v1848_v26  ;;  %v1855_v35 = vmax.f32 %v1838_v62, 0.0 }
 0x8fc   :  { %v4068_v63 = vpack.c.bf16 %v1854_v2, %v1850_v0  ;;  %v4058_v4 = vpack.c.bf16 %v1853_v32, %v1849_v1 }
 0x8fd   :  { %v4066_v17 = vpack.c.bf16 %v1855_v35, %v1851_v33 }
 0x8fe   :  { %4059 = vmatprep.subr.bf16.mxu0 %v4058_v4 }
 0x8ff   :  { %4067 = vmatprep.subr.bf16.mxu1 %v4066_v17  ;;  %4061 = vmatpush1.bf16.msra.mxu0 %v4060_v34 }
 0x900   :  { %4069 = vmatpush1.bf16.msra.mxu1 %v4068_v63 }
 0x902   :  { %3936 = vmatmul.mubr.msk.f32.vlgmr.msra.gmra.mrb[52].mxu0 %vm476_vm1, %v4372_v14 }
 0x903   :  { %3937 = vmatmul.mubr.msk.f32.vlgmr.msra.gmra.mrb[52].mxu1 %vm476_vm1, %v4372_v14  ;;  %2070 = vmatprep.mubr.f32.mxu0 %v4167_v3 }
 0x904   :  { %2159 = vmatprep.mubr.f32.mxu1 %v4167_v3 }
 0x9d5   :  { %v1922_v18 = vpop.f32.mrb[52].mxu0 }
 0x9d6   :  { %v1923_v5 = vadd.f32 %v1922_v18, %v4380_v15  ;;  %v1993_v19 = vpop.f32.mrb[52].mxu1  ;;  %v1924_v20 = vpop.f32.mrb[53].mxu0 }
 0x9d7   :  { %v1994_v41 = vadd.f32 %v1993_v19, %v4380_v15  ;;  %v1925_v42 = vadd.f32 %v1924_v20, %v4380_v15  ;;  %v1995_v44 = vpop.f32.mrb[53].mxu1 }
 0x9d8   :  { %v1998_v6 = vmul.f32 0.016666668, %v1923_v5  ;;  %v1996_v45 = vadd.f32 %v1995_v44, %v4380_v15 }
 0x9d9   :  { %v2000_v46 = vmul.f32 0.016666668, %v1994_v41  ;;  %v1999_v47 = vmul.f32 0.016666668, %v1925_v42 }
 0x9da   :  { %v2001_v14 = vmul.f32 0.016666668, %v1996_v45  ;;  %v4654_v28 = vsub.f32 %v4588_v38, %v1998_v6  ;;  %v4680_v38 = vld [vmem:[%s5027_s1 + $0x18] sm:$0xff] }
 0x9db   :  { %v4651_v48 = vsub.f32 %v4585_v36, %v1999_v47  ;;  %v4660_v30 = vsub.f32 %v4594_v40, %v2000_v46  ;;  %v4669_v36 = vld [vmem:[%s5027_s1 + $0x10] sm:$0xff]  ;;  %v4702_v40 = vld [vmem:[%s5027_s1 + $0x28] sm:$0xff] }
 0x9dc   :  { %v4657_v29 = vsub.f32 %v4591_v39, %v2001_v14  ;;  %v4691_v39 = vld [vmem:[%s5027_s1 + $0x20] sm:$0xff] }
 0x9dd   :  { %2006 = vmatprep.subr.mxu0 %v4651_v48 }
 0x9de   :  { %2095 = vmatprep.subr.mxu1 %v4657_v29  ;;  %2007 = vmatpush1.msra.mxu0 %v4654_v28 }
 0x9df   :  { %2096 = vmatpush1.msra.mxu1 %v4660_v30  ;;  %3938 = vmatmul.mubr.msk.f32.vlgmr.msra.gmra.mrb[54].mxu0 %vm77_vm0, %v4669_v36 }
 0x9e0   :  { %3942 = vmatmul.mubr.msk.f32.vlgmr.msra.gmra.mrb[54].mxu1 %vm77_vm0, %v4669_v36  ;;  %2076 = vmatprep.mubr.f32.mxu0 %v4167_v3 }
 0x9e1   :  { %2165 = vmatprep.mubr.f32.mxu1 %v4167_v3 }
 0x9e3   :  { %3939 = vmatmul.mubr.msk.f32.gmra.mrb[56].mxu0 %vm77_vm0, %v4680_v38 }
 0x9e4   :  { %3943 = vmatmul.mubr.msk.f32.gmra.mrb[56].mxu1 %vm77_vm0, %v4680_v38  ;;  %2082 = vmatprep.mubr.f32.mxu0 %v4167_v3 }
 0x9e5   :  { %2171 = vmatprep.mubr.f32.mxu1 %v4167_v3 }
 0x9e7   :  { %3940 = vmatmul.mubr.msk.f32.gmra.mrb[58].mxu0 %vm77_vm0, %v4691_v39 }
 0x9e8   :  { %3944 = vmatmul.mubr.msk.f32.gmra.mrb[58].mxu1 %vm77_vm0, %v4691_v39  ;;  %2088 = vmatprep.mubr.f32.mxu0 %v4167_v3 }
 0x9e9   :  { %2177 = vmatprep.mubr.f32.mxu1 %v4167_v3 }
 0x9eb   :  { %3941 = vmatmul.mubr.msk.f32.gmra.mrb[60].mxu0 %vm77_vm0, %v4702_v40 }
 0x9ec   :  { %3945 = vmatmul.mubr.msk.f32.gmra.mrb[60].mxu1 %vm77_vm0, %v4702_v40  ;;  %2264 = vmatprep.mubr.f32.mxu0 %v4167_v3 }
 0x9ed   :  { %2335 = vmatprep.mubr.f32.mxu1 %v4167_v3 }
 0xab2   :  { %v2072_v31 = vpop.f32.mrb[54].mxu0 }
 0xab3   :  { %v2161_v53 = vpop.f32.mrb[54].mxu1  ;;  %v2074_v54 = vpop.f32.mrb[55].mxu0  ;;  %v2073_v56 = vadd.f32 %v2072_v31, %v4345_v7 }
 0xab4   :  { %v2163_v55 = vpop.f32.mrb[55].mxu1  ;;  %v2162_v57 = vadd.f32 %v2161_v53, %v4345_v7  ;;  %v2075_v58 = vadd.f32 %v2074_v54, %v4345_v7 }
 0xab5   :  { %v2164_v60 = vadd.f32 %v2163_v55, %v4345_v7  ;;  %v2184_v16 = vmax.f32 %v2073_v56, 0.0 }
 0xab6   :  { %v2078_v59 = vpop.f32.mrb[56].mxu0  ;;  %v2186_v51 = vmax.f32 %v2162_v57, 0.0  ;;  %v2185_v52 = vmax.f32 %v2075_v58, 0.0  ;;  %v4729_v58 = vld [vmem:[%s5027_s1 + $0x30] sm:$0xff] }
 0xab7   :  { %v2079_v61 = vadd.f32 %v2078_v59, %v4348_v13  ;;  %v2167_v8 = vpop.f32.mrb[56].mxu1  ;;  %v2080_v9 = vpop.f32.mrb[57].mxu0  ;;  %v2187_v24 = vmax.f32 %v2164_v60, 0.0 }
 0xab8   :  { %v2168_v10 = vadd.f32 %v2167_v8, %v4348_v13  ;;  %v2081_v11 = vadd.f32 %v2080_v9, %v4348_v13  ;;  %v2169_v12 = vpop.f32.mrb[57].mxu1 }
 0xab9   :  { %v2188_v49 = vmax.f32 %v2079_v61, 0.0  ;;  %v2170_v50 = vadd.f32 %v2169_v12, %v4348_v13 }
 0xaba   :  { %v2190_v21 = vmax.f32 %v2168_v10, 0.0  ;;  %v2189_v22 = vmax.f32 %v2081_v11, 0.0  ;;  %v2084_v23 = vpop.f32.mrb[58].mxu0 }
 0xabb   :  { %v4072_v25 = vpack.c.bf16 %v2188_v49, %v2184_v16  ;;  %v2191_v26 = vmax.f32 %v2170_v50, 0.0  ;;  %v2173_v27 = vpop.f32.mrb[58].mxu1  ;;  %v2086_v62 = vpop.f32.mrb[59].mxu0  ;;  %v2085_v33 = vadd.f32 %v2084_v23, %v4357_v37 }
 0xabc   :  { %v4080_v0 = vpack.c.bf16 %v2190_v21, %v2186_v51  ;;  %v4070_v1 = vpack.c.bf16 %v2189_v22, %v2185_v52  ;;  %v2175_v2 = vpop.f32.mrb[59].mxu1  ;;  %v2174_v34 = vadd.f32 %v2173_v27, %v4357_v37  ;;  %v2087_v35 = vadd.f32 %v2086_v62, %v4357_v37 }
 0xabd   :  { %v4078_v32 = vpack.c.bf16 %v2191_v26, %v2187_v24  ;;  %v2176_v4 = vadd.f32 %v2175_v2, %v4357_v37  ;;  %v2192_v42 = vmax.f32 %v2085_v33, 0.0 }
 0xabe   :  { %v2090_v63 = vpop.f32.mrb[60].mxu0  ;;  %4071 = vmatprep.subr.bf16.mxu0 %v4070_v1  ;;  %v2194_v45 = vmax.f32 %v2174_v34, 0.0  ;;  %v2193_v46 = vmax.f32 %v2087_v35, 0.0 }
 0xabf   :  { %v2091_v17 = vadd.f32 %v2090_v63, %v4360_v43  ;;  %v2179_v18 = vpop.f32.mrb[60].mxu1  ;;  %4079 = vmatprep.subr.bf16.mxu1 %v4078_v32  ;;  %v2092_v5 = vpop.f32.mrb[61].mxu0  ;;  %4073 = vmatpush1.bf16.msra.mxu0 %v4072_v25  ;;  %v2195_v31 = vmax.f32 %v2176_v4, 0.0 }
 0xac0   :  { %v2180_v19 = vadd.f32 %v2179_v18, %v4360_v43  ;;  %v2093_v20 = vadd.f32 %v2092_v5, %v4360_v43  ;;  %v2181_v41 = vpop.f32.mrb[61].mxu1  ;;  %4081 = vmatpush1.bf16.msra.mxu1 %v4080_v0 }
 0xac1   :  { %v2196_v44 = vmax.f32 %v2091_v17, 0.0  ;;  %v2182_v6 = vadd.f32 %v2181_v41, %v4360_v43 }
 0xac2   :  { %v2198_v47 = vmax.f32 %v2180_v19, 0.0  ;;  %v2197_v14 = vmax.f32 %v2093_v20, 0.0 }
 0xac3   :  { %v4076_v53 = vpack.c.bf16 %v2196_v44, %v2192_v42  ;;  %v2199_v54 = vmax.f32 %v2182_v6, 0.0 }
 0xac4   :  { %v4084_v55 = vpack.c.bf16 %v2198_v47, %v2194_v45  ;;  %v4074_v56 = vpack.c.bf16 %v2197_v14, %v2193_v46 }
 0xac5   :  { %v4082_v57 = vpack.c.bf16 %v2199_v54, %v2195_v31 }
 0xac6   :  { %4075 = vmatprep.subr.bf16.mxu0 %v4074_v56 }
 0xac7   :  { %4083 = vmatprep.subr.bf16.mxu1 %v4082_v57  ;;  %4077 = vmatpush1.bf16.msra.mxu0 %v4076_v53 }
 0xac8   :  { %4085 = vmatpush1.bf16.msra.mxu1 %v4084_v55 }
 0xaca   :  { %3946 = vmatmul.mubr.msk.f32.vlgmr.msra.gmra.mrb[62].mxu0 %vm476_vm1, %v4729_v58 }
 0xacb   :  { %3947 = vmatmul.mubr.msk.f32.vlgmr.msra.gmra.mrb[62].mxu1 %vm476_vm1, %v4729_v58  ;;  %2414 = vmatprep.mubr.f32.mxu0 %v4167_v3 }
 0xacc   :  { %2503 = vmatprep.mubr.f32.mxu1 %v4167_v3 }
 0xb9d   :  { %v2266_v59 = vpop.f32.mrb[62].mxu0 }
 0xb9e   :  { %v2267_v60 = vadd.f32 %v2266_v59, %v4380_v15  ;;  %v2337_v61 = vpop.f32.mrb[62].mxu1  ;;  %v2268_v8 = vpop.f32.mrb[63].mxu0 }
 0xb9f   :  { %v2338_v9 = vadd.f32 %v2337_v61, %v4380_v15  ;;  %v2269_v10 = vadd.f32 %v2268_v8, %v4380_v15  ;;  %v2339_v11 = vpop.f32.mrb[63].mxu1 }
 0xba0   :  { %v2342_v12 = vmul.f32 0.02, %v2267_v60  ;;  %v2340_v16 = vadd.f32 %v2339_v11, %v4380_v15 }
 0xba1   :  { %v2344_v49 = vmul.f32 0.02, %v2338_v9  ;;  %v2343_v50 = vmul.f32 0.02, %v2269_v10 }
 0xba2   :  { %v2345_v51 = vmul.f32 0.02, %v2340_v16  ;;  %v4745_v21 = vsub.f32 %v4654_v28, %v2342_v12 }
 0xba3   :  { %v4742_v52 = vsub.f32 %v4651_v48, %v2343_v50  ;;  %v4751_v23 = vsub.f32 %v4660_v30, %v2344_v49 }
 0xba4   :  { %v4748_v22 = vsub.f32 %v4657_v29, %v2345_v51 }
 0xba5   :  { %2350 = vmatprep.subr.mxu0 %v4742_v52 }
 0xba6   :  { %2439 = vmatprep.subr.mxu1 %v4748_v22  ;;  %2351 = vmatpush1.msra.mxu0 %v4745_v21 }
 0xba7   :  { %2440 = vmatpush1.msra.mxu1 %v4751_v23  ;;  %3948 = vmatmul.mubr.msk.f32.vlgmr.msra.gmra.mrb[64].mxu0 %vm77_vm0, %v4669_v36 }
 0xba8   :  { %3952 = vmatmul.mubr.msk.f32.vlgmr.msra.gmra.mrb[64].mxu1 %vm77_vm0, %v4669_v36  ;;  %2420 = vmatprep.mubr.f32.mxu0 %v4167_v3 }
 0xba9   :  { %2509 = vmatprep.mubr.f32.mxu1 %v4167_v3 }
 0xbab   :  { %3949 = vmatmul.mubr.msk.f32.gmra.mrb[66].mxu0 %vm77_vm0, %v4680_v38 }
 0xbac   :  { %3953 = vmatmul.mubr.msk.f32.gmra.mrb[66].mxu1 %vm77_vm0, %v4680_v38  ;;  %2426 = vmatprep.mubr.f32.mxu0 %v4167_v3 }
 0xbad   :  { %2515 = vmatprep.mubr.f32.mxu1 %v4167_v3 }
 0xbaf   :  { %3950 = vmatmul.mubr.msk.f32.gmra.mrb[68].mxu0 %vm77_vm0, %v4691_v39 }
 0xbb0   :  { %3954 = vmatmul.mubr.msk.f32.gmra.mrb[68].mxu1 %vm77_vm0, %v4691_v39  ;;  %2432 = vmatprep.mubr.f32.mxu0 %v4167_v3 }
 0xbb1   :  { %2521 = vmatprep.mubr.f32.mxu1 %v4167_v3 }
 0xbb3   :  { %3951 = vmatmul.mubr.msk.f32.gmra.mrb[70].mxu0 %vm77_vm0, %v4702_v40 }
 0xbb4   :  { %3955 = vmatmul.mubr.msk.f32.gmra.mrb[70].mxu1 %vm77_vm0, %v4702_v40  ;;  %2608 = vmatprep.mubr.f32.mxu0 %v4167_v3 }
 0xbb5   :  { %2679 = vmatprep.mubr.f32.mxu1 %v4167_v3 }
 0xc7a   :  { %v2416_v48 = vpop.f32.mrb[64].mxu0 }
 0xc7b   :  { %v2505_v28 = vpop.f32.mrb[64].mxu1  ;;  %v2418_v29 = vpop.f32.mrb[65].mxu0  ;;  %v2417_v24 = vadd.f32 %v2416_v48, %v4345_v7 }
 0xc7c   :  { %v2507_v30 = vpop.f32.mrb[65].mxu1  ;;  %v2506_v25 = vadd.f32 %v2505_v28, %v4345_v7  ;;  %v2419_v26 = vadd.f32 %v2418_v29, %v4345_v7 }
 0xc7d   :  { %v2508_v62 = vadd.f32 %v2507_v30, %v4345_v7  ;;  %v2528_v35 = vmax.f32 %v2417_v24, 0.0 }
 0xc7e   :  { %v2422_v27 = vpop.f32.mrb[66].mxu0  ;;  %v2530_v17 = vmax.f32 %v2506_v25, 0.0  ;;  %v2529_v18 = vmax.f32 %v2419_v26, 0.0 }
 0xc7f   :  { %v2423_v0 = vadd.f32 %v2422_v27, %v4348_v13  ;;  %v2511_v1 = vpop.f32.mrb[66].mxu1  ;;  %v2424_v2 = vpop.f32.mrb[67].mxu0  ;;  %v2531_v41 = vmax.f32 %v2508_v62, 0.0 }
 0xc80   :  { %v2512_v32 = vadd.f32 %v2511_v1, %v4348_v13  ;;  %v2425_v33 = vadd.f32 %v2424_v2, %v4348_v13  ;;  %v2513_v34 = vpop.f32.mrb[67].mxu1 }
 0xc81   :  { %v2532_v63 = vmax.f32 %v2423_v0, 0.0  ;;  %v2514_v4 = vadd.f32 %v2513_v34, %v4348_v13 }
 0xc82   :  { %v2534_v5 = vmax.f32 %v2512_v32, 0.0  ;;  %v2533_v19 = vmax.f32 %v2425_v33, 0.0  ;;  %v2428_v20 = vpop.f32.mrb[68].mxu0 }
 0xc83   :  { %v4088_v42 = vpack.c.bf16 %v2532_v63, %v2528_v35  ;;  %v2535_v44 = vmax.f32 %v2514_v4, 0.0  ;;  %v2517_v6 = vpop.f32.mrb[68].mxu1  ;;  %v2430_v45 = vpop.f32.mrb[69].mxu0  ;;  %v2429_v53 = vadd.f32 %v2428_v20, %v4357_v37 }
 0xc84   :  { %v4096_v46 = vpack.c.bf16 %v2534_v5, %v2530_v17  ;;  %v4086_v47 = vpack.c.bf16 %v2533_v19, %v2529_v18  ;;  %v2519_v14 = vpop.f32.mrb[69].mxu1  ;;  %v2518_v54 = vadd.f32 %v2517_v6, %v4357_v37  ;;  %v2431_v55 = vadd.f32 %v2430_v45, %v4357_v37 }
 0xc85   :  { %v4094_v31 = vpack.c.bf16 %v2535_v44, %v2531_v41  ;;  %v2520_v57 = vadd.f32 %v2519_v14, %v4357_v37  ;;  %v2536_v11 = vmax.f32 %v2429_v53, 0.0 }
 0xc86   :  { %v2434_v56 = vpop.f32.mrb[70].mxu0  ;;  %4087 = vmatprep.subr.bf16.mxu0 %v4086_v47  ;;  %v2538_v49 = vmax.f32 %v2518_v54, 0.0  ;;  %v2537_v50 = vmax.f32 %v2431_v55, 0.0 }
 0xc87   :  { %v2435_v59 = vadd.f32 %v2434_v56, %v4360_v43  ;;  %v2523_v60 = vpop.f32.mrb[70].mxu1  ;;  %4095 = vmatprep.subr.bf16.mxu1 %v4094_v31  ;;  %v2436_v61 = vpop.f32.mrb[71].mxu0  ;;  %4089 = vmatpush1.bf16.msra.mxu0 %v4088_v42  ;;  %v2539_v28 = vmax.f32 %v2520_v57, 0.0 }
 0xc88   :  { %v2524_v8 = vadd.f32 %v2523_v60, %v4360_v43  ;;  %v2437_v9 = vadd.f32 %v2436_v61, %v4360_v43  ;;  %v2525_v10 = vpop.f32.mrb[71].mxu1  ;;  %4097 = vmatpush1.bf16.msra.mxu1 %v4096_v46 }
 0xc89   :  { %v2540_v12 = vmax.f32 %v2435_v59, 0.0  ;;  %v2526_v16 = vadd.f32 %v2525_v10, %v4360_v43 }
 0xc8a   :  { %v2542_v51 = vmax.f32 %v2524_v8, 0.0  ;;  %v2541_v48 = vmax.f32 %v2437_v9, 0.0 }
 0xc8b   :  { %v4092_v29 = vpack.c.bf16 %v2540_v12, %v2536_v11  ;;  %v2543_v30 = vmax.f32 %v2526_v16, 0.0 }
 0xc8c   :  { %v4100_v24 = vpack.c.bf16 %v2542_v51, %v2538_v49  ;;  %v4090_v25 = vpack.c.bf16 %v2541_v48, %v2537_v50 }
 0xc8d   :  { %v4098_v26 = vpack.c.bf16 %v2543_v30, %v2539_v28 }
 0xc8e   :  { %4091 = vmatprep.subr.bf16.mxu0 %v4090_v25 }
 0xc8f   :  { %4099 = vmatprep.subr.bf16.mxu1 %v4098_v26  ;;  %4093 = vmatpush1.bf16.msra.mxu0 %v4092_v29 }
 0xc90   :  { %4101 = vmatpush1.bf16.msra.mxu1 %v4100_v24 }
 0xc92   :  { %3956 = vmatmul.mubr.msk.f32.vlgmr.msra.gmra.mrb[72].mxu0 %vm476_vm1, %v4729_v58 }
 0xc93   :  { %3957 = vmatmul.mubr.msk.f32.vlgmr.msra.gmra.mrb[72].mxu1 %vm476_vm1, %v4729_v58  ;;  %2758 = vmatprep.mubr.f32.mxu0 %v4167_v3 }
 0xc94   :  { %2847 = vmatprep.mubr.f32.mxu1 %v4167_v3 }
 0xd65   :  { %v2610_v27 = vpop.f32.mrb[72].mxu0 }
 0xd66   :  { %v2611_v62 = vadd.f32 %v2610_v27, %v4380_v15  ;;  %v2681_v0 = vpop.f32.mrb[72].mxu1  ;;  %v2612_v1 = vpop.f32.mrb[73].mxu0 }
 0xd67   :  { %v2682_v2 = vadd.f32 %v2681_v0, %v4380_v15  ;;  %v2613_v32 = vadd.f32 %v2612_v1, %v4380_v15  ;;  %v2683_v33 = vpop.f32.mrb[73].mxu1 }
 0xd68   :  { %v2686_v34 = vmul.f32 0.025, %v2611_v62  ;;  %v2684_v35 = vadd.f32 %v2683_v33, %v4380_v15 }
 0xd69   :  { %v2688_v63 = vmul.f32 0.025, %v2682_v2  ;;  %v2687_v4 = vmul.f32 0.025, %v2613_v32 }
 0xd6a   :  { %v2689_v17 = vmul.f32 0.025, %v2684_v35  ;;  %v4811_v5 = vsub.f32 %v4745_v21, %v2686_v34 }
 0xd6b   :  { %v4808_v18 = vsub.f32 %v4742_v52, %v2687_v4  ;;  %v4817_v20 = vsub.f32 %v4751_v23, %v2688_v63 }
 0xd6c   :  { %v4814_v19 = vsub.f32 %v4748_v22, %v2689_v17 }
 0xd6d   :  { %2694 = vmatprep.subr.mxu0 %v4808_v18 }
 0xd6e   :  { %2783 = vmatprep.subr.mxu1 %v4814_v19  ;;  %2695 = vmatpush1.msra.mxu0 %v4811_v5 }
 0xd6f   :  { %2784 = vmatpush1.msra.mxu1 %v4817_v20  ;;  %3958 = vmatmul.mubr.msk.f32.vlgmr.msra.gmra.mrb[74].mxu0 %vm77_vm0, %v4669_v36 }
 0xd70   :  { %3962 = vmatmul.mubr.msk.f32.vlgmr.msra.gmra.mrb[74].mxu1 %vm77_vm0, %v4669_v36  ;;  %2764 = vmatprep.mubr.f32.mxu0 %v4167_v3 }
 0xd71   :  { %2853 = vmatprep.mubr.f32.mxu1 %v4167_v3 }
 0xd73   :  { %3959 = vmatmul.mubr.msk.f32.gmra.mrb[76].mxu0 %vm77_vm0, %v4680_v38 }
 0xd74   :  { %3963 = vmatmul.mubr.msk.f32.gmra.mrb[76].mxu1 %vm77_vm0, %v4680_v38  ;;  %2770 = vmatprep.mubr.f32.mxu0 %v4167_v3 }
 0xd75   :  { %2859 = vmatprep.mubr.f32.mxu1 %v4167_v3 }
 0xd77   :  { %3960 = vmatmul.mubr.msk.f32.gmra.mrb[78].mxu0 %vm77_vm0, %v4691_v39 }
 0xd78   :  { %3964 = vmatmul.mubr.msk.f32.gmra.mrb[78].mxu1 %vm77_vm0, %v4691_v39  ;;  %2776 = vmatprep.mubr.f32.mxu0 %v4167_v3 }
 0xd79   :  { %2865 = vmatprep.mubr.f32.mxu1 %v4167_v3 }
 0xd7b   :  { %3961 = vmatmul.mubr.msk.f32.gmra.mrb[80].mxu0 %vm77_vm0, %v4702_v40 }
 0xd7c   :  { %3965 = vmatmul.mubr.msk.f32.gmra.mrb[80].mxu1 %vm77_vm0, %v4702_v40  ;;  %2952 = vmatprep.mubr.f32.mxu0 %v4167_v3 }
 0xd7d   :  { %3023 = vmatprep.mubr.f32.mxu1 %v4167_v3 }
 0xe42   :  { %v2760_v52 = vpop.f32.mrb[74].mxu0 }
 0xe43   :  { %v2849_v21 = vpop.f32.mrb[74].mxu1  ;;  %v2762_v22 = vpop.f32.mrb[75].mxu0  ;;  %v2761_v41 = vadd.f32 %v2760_v52, %v4345_v7 }
 0xe44   :  { %v2851_v23 = vpop.f32.mrb[75].mxu1  ;;  %v2850_v42 = vadd.f32 %v2849_v21, %v4345_v7  ;;  %v2763_v44 = vadd.f32 %v2762_v22, %v4345_v7 }
 0xe45   :  { %v2852_v45 = vadd.f32 %v2851_v23, %v4345_v7  ;;  %v2872_v55 = vmax.f32 %v2761_v41, 0.0 }
 0xe46   :  { %v2766_v6 = vpop.f32.mrb[76].mxu0  ;;  %v2874_v59 = vmax.f32 %v2850_v42, 0.0  ;;  %v2873_v60 = vmax.f32 %v2763_v44, 0.0 }
 0xe47   :  { %v2767_v46 = vadd.f32 %v2766_v6, %v4348_v13  ;;  %v2855_v47 = vpop.f32.mrb[76].mxu1  ;;  %v2768_v14 = vpop.f32.mrb[77].mxu0  ;;  %v2875_v10 = vmax.f32 %v2852_v45, 0.0 }
 0xe48   :  { %v2856_v31 = vadd.f32 %v2855_v47, %v4348_v13  ;;  %v2769_v53 = vadd.f32 %v2768_v14, %v4348_v13  ;;  %v2857_v54 = vpop.f32.mrb[77].mxu1 }
 0xe49   :  { %v2876_v56 = vmax.f32 %v2767_v46, 0.0  ;;  %v2858_v57 = vadd.f32 %v2857_v54, %v4348_v13 }
 0xe4a   :  { %v2878_v61 = vmax.f32 %v2856_v31, 0.0  ;;  %v2877_v8 = vmax.f32 %v2769_v53, 0.0  ;;  %v2772_v9 = vpop.f32.mrb[78].mxu0 }
 0xe4b   :  { %v4104_v11 = vpack.c.bf16 %v2876_v56, %v2872_v55  ;;  %v2879_v12 = vmax.f32 %v2858_v57, 0.0  ;;  %v2861_v16 = vpop.f32.mrb[78].mxu1  ;;  %v2774_v49 = vpop.f32.mrb[79].mxu0  ;;  %v2773_v29 = vadd.f32 %v2772_v9, %v4357_v37 }
 0xe4c   :  { %v4112_v50 = vpack.c.bf16 %v2878_v61, %v2874_v59  ;;  %v4102_v51 = vpack.c.bf16 %v2877_v8, %v2873_v60  ;;  %v2863_v48 = vpop.f32.mrb[79].mxu1  ;;  %v2862_v30 = vadd.f32 %v2861_v16, %v4357_v37  ;;  %v2775_v24 = vadd.f32 %v2774_v49, %v4357_v37 }
 0xe4d   :  { %v4110_v28 = vpack.c.bf16 %v2879_v12, %v2875_v10  ;;  %v2864_v26 = vadd.f32 %v2863_v48, %v4357_v37  ;;  %v2880_v33 = vmax.f32 %v2773_v29, 0.0 }
 0xe4e   :  { %v2778_v25 = vpop.f32.mrb[80].mxu0  ;;  %4103 = vmatprep.subr.bf16.mxu0 %v4102_v51  ;;  %v2882_v63 = vmax.f32 %v2862_v30, 0.0  ;;  %v2881_v4 = vmax.f32 %v2775_v24, 0.0 }
 0xe4f   :  { %v2779_v27 = vadd.f32 %v2778_v25, %v4360_v43  ;;  %v2867_v62 = vpop.f32.mrb[80].mxu1  ;;  %4111 = vmatprep.subr.bf16.mxu1 %v4110_v28  ;;  %v2780_v0 = vpop.f32.mrb[81].mxu0  ;;  %4105 = vmatpush1.bf16.msra.mxu0 %v4104_v11  ;;  %v2883_v21 = vmax.f32 %v2864_v26, 0.0 }
 0xe50   :  { %v2868_v1 = vadd.f32 %v2867_v62, %v4360_v43  ;;  %v2781_v2 = vadd.f32 %v2780_v0, %v4360_v43  ;;  %v2869_v32 = vpop.f32.mrb[81].mxu1  ;;  %4113 = vmatpush1.bf16.msra.mxu1 %v4112_v50 }
 0xe51   :  { %v2884_v34 = vmax.f32 %v2779_v27, 0.0  ;;  %v2870_v35 = vadd.f32 %v2869_v32, %v4360_v43 }
 0xe52   :  { %v2886_v17 = vmax.f32 %v2868_v1, 0.0  ;;  %v2885_v52 = vmax.f32 %v2781_v2, 0.0 }
 0xe53   :  { %v4108_v22 = vpack.c.bf16 %v2884_v34, %v2880_v33  ;;  %v2887_v23 = vmax.f32 %v2870_v35, 0.0 }
 0xe54   :  { %v4116_v41 = vpack.c.bf16 %v2886_v17, %v2882_v63  ;;  %v4106_v42 = vpack.c.bf16 %v2885_v52, %v2881_v4 }
 0xe55   :  { %v4114_v44 = vpack.c.bf16 %v2887_v23, %v2883_v21 }
 0xe56   :  { %4107 = vmatprep.subr.bf16.mxu0 %v4106_v42 }
 0xe57   :  { %4115 = vmatprep.subr.bf16.mxu1 %v4114_v44  ;;  %4109 = vmatpush1.bf16.msra.mxu0 %v4108_v22 }
 0xe58   :  { %4117 = vmatpush1.bf16.msra.mxu1 %v4116_v41 }
 0xe5a   :  { %3966 = vmatmul.mubr.msk.f32.vlgmr.msra.gmra.mrb[82].mxu0 %vm476_vm1, %v4729_v58 }
 0xe5b   :  { %3967 = vmatmul.mubr.msk.f32.vlgmr.msra.gmra.mrb[82].mxu1 %vm476_vm1, %v4729_v58  ;;  %3102 = vmatprep.mubr.f32.mxu0 %v4167_v3 }
 0xe5c   :  { %3191 = vmatprep.mubr.f32.mxu1 %v4167_v3 }
 0xf2d   :  { %v2954_v6 = vpop.f32.mrb[82].mxu0 }
 0xf2e   :  { %v2955_v45 = vadd.f32 %v2954_v6, %v4380_v15  ;;  %v3025_v46 = vpop.f32.mrb[82].mxu1  ;;  %v2956_v47 = vpop.f32.mrb[83].mxu0 }
 0xf2f   :  { %v3026_v14 = vadd.f32 %v3025_v46, %v4380_v15  ;;  %v2957_v31 = vadd.f32 %v2956_v47, %v4380_v15  ;;  %v3027_v53 = vpop.f32.mrb[83].mxu1 }
 0xf30   :  { %v3030_v54 = vmul.f32 0.033333335, %v2955_v45  ;;  %v3028_v55 = vadd.f32 %v3027_v53, %v4380_v15 }
 0xf31   :  { %v3032_v56 = vmul.f32 0.033333335, %v3026_v14  ;;  %v3031_v57 = vmul.f32 0.033333335, %v2957_v31 }
 0xf32   :  { %v3033_v59 = vmul.f32 0.033333335, %v3028_v55  ;;  %v4877_v61 = vsub.f32 %v4811_v5, %v3030_v54 }
 0xf33   :  { %v4874_v60 = vsub.f32 %v4808_v18, %v3031_v57  ;;  %v4883_v9 = vsub.f32 %v4817_v20, %v3032_v56 }
 0xf34   :  { %v4880_v8 = vsub.f32 %v4814_v19, %v3033_v59 }
 0xf35   :  { %3038 = vmatprep.subr.mxu0 %v4874_v60 }
 0xf36   :  { %3127 = vmatprep.subr.mxu1 %v4880_v8  ;;  %3039 = vmatpush1.msra.mxu0 %v4877_v61 }
 0xf37   :  { %3128 = vmatpush1.msra.mxu1 %v4883_v9  ;;  %3968 = vmatmul.mubr.msk.f32.vlgmr.msra.gmra.mrb[84].mxu0 %vm77_vm0, %v4669_v36 }
 0xf38   :  { %3972 = vmatmul.mubr.msk.f32.vlgmr.msra.gmra.mrb[84].mxu1 %vm77_vm0, %v4669_v36  ;;  %3108 = vmatprep.mubr.f32.mxu0 %v4167_v3 }
 0xf39   :  { %3197 = vmatprep.mubr.f32.mxu1 %v4167_v3 }
 0xf3b   :  { %3969 = vmatmul.mubr.msk.f32.gmra.mrb[86].mxu0 %vm77_vm0, %v4680_v38 }
 0xf3c   :  { %3973 = vmatmul.mubr.msk.f32.gmra.mrb[86].mxu1 %vm77_vm0, %v4680_v38  ;;  %3114 = vmatprep.mubr.f32.mxu0 %v4167_v3 }
 0xf3d   :  { %3203 = vmatprep.mubr.f32.mxu1 %v4167_v3 }
 0xf3f   :  { %3970 = vmatmul.mubr.msk.f32.gmra.mrb[88].mxu0 %vm77_vm0, %v4691_v39 }
 0xf40   :  { %3974 = vmatmul.mubr.msk.f32.gmra.mrb[88].mxu1 %vm77_vm0, %v4691_v39  ;;  %3120 = vmatprep.mubr.f32.mxu0 %v4167_v3 }
 0xf41   :  { %3209 = vmatprep.mubr.f32.mxu1 %v4167_v3 }
 0xf43   :  { %3971 = vmatmul.mubr.msk.f32.gmra.mrb[90].mxu0 %vm77_vm0, %v4702_v40 }
 0xf44   :  { %3975 = vmatmul.mubr.msk.f32.gmra.mrb[90].mxu1 %vm77_vm0, %v4702_v40  ;;  %3296 = vmatprep.mubr.f32.mxu0 %v4167_v3 }
 0xf45   :  { %3367 = vmatprep.mubr.f32.mxu1 %v4167_v3 }
0x100a   :  { %v3104_v18 = vpop.f32.mrb[84].mxu0 }
0x100b   :  { %v3193_v5 = vpop.f32.mrb[84].mxu1  ;;  %v3106_v19 = vpop.f32.mrb[85].mxu0  ;;  %v3105_v10 = vadd.f32 %v3104_v18, %v4345_v7 }
0x100c   :  { %v3195_v20 = vpop.f32.mrb[85].mxu1  ;;  %v3194_v11 = vadd.f32 %v3193_v5, %v4345_v7  ;;  %v3107_v12 = vadd.f32 %v3106_v19, %v4345_v7 }
0x100d   :  { %v3196_v49 = vadd.f32 %v3195_v20, %v4345_v7  ;;  %v3216_v24 = vmax.f32 %v3105_v10, 0.0 }
0x100e   :  { %v3110_v16 = vpop.f32.mrb[86].mxu0  ;;  %v3218_v27 = vmax.f32 %v3194_v11, 0.0  ;;  %v3217_v62 = vmax.f32 %v3107_v12, 0.0 }
0x100f   :  { %v3111_v50 = vadd.f32 %v3110_v16, %v4348_v13  ;;  %v3199_v51 = vpop.f32.mrb[86].mxu1  ;;  %v3112_v48 = vpop.f32.mrb[87].mxu0  ;;  %v3219_v32 = vmax.f32 %v3196_v49, 0.0 }
0x1010   :  { %v3200_v28 = vadd.f32 %v3199_v51, %v4348_v13  ;;  %v3113_v29 = vadd.f32 %v3112_v48, %v4348_v13  ;;  %v3201_v30 = vpop.f32.mrb[87].mxu1 }
0x1011   :  { %v3220_v25 = vmax.f32 %v3111_v50, 0.0  ;;  %v3202_v26 = vadd.f32 %v3201_v30, %v4348_v13 }
0x1012   :  { %v3222_v0 = vmax.f32 %v3200_v28, 0.0  ;;  %v3221_v1 = vmax.f32 %v3113_v29, 0.0  ;;  %v3116_v2 = vpop.f32.mrb[88].mxu0 }
0x1013   :  { %v4120_v33 = vpack.c.bf16 %v3220_v25, %v3216_v24  ;;  %v3223_v34 = vmax.f32 %v3202_v26, 0.0  ;;  %v3205_v35 = vpop.f32.mrb[88].mxu1  ;;  %v3118_v63 = vpop.f32.mrb[89].mxu0  ;;  %v3117_v22 = vadd.f32 %v3116_v2, %v4357_v37 }
0x1014   :  { %v4128_v4 = vpack.c.bf16 %v3222_v0, %v3218_v27  ;;  %v4118_v17 = vpack.c.bf16 %v3221_v1, %v3217_v62  ;;  %v3207_v52 = vpop.f32.mrb[89].mxu1  ;;  %v3206_v23 = vadd.f32 %v3205_v35, %v4357_v37  ;;  %v3119_v41 = vadd.f32 %v3118_v63, %v4357_v37 }
0x1015   :  { %v4126_v21 = vpack.c.bf16 %v3223_v34, %v3219_v32  ;;  %v3208_v44 = vadd.f32 %v3207_v52, %v4357_v37  ;;  %v3224_v53 = vmax.f32 %v3117_v22, 0.0 }
0x1016   :  { %v3122_v42 = vpop.f32.mrb[90].mxu0  ;;  %4119 = vmatprep.subr.bf16.mxu0 %v4118_v17  ;;  %v3226_v56 = vmax.f32 %v3206_v23, 0.0  ;;  %v3225_v57 = vmax.f32 %v3119_v41, 0.0 }
0x1017   :  { %v3123_v6 = vadd.f32 %v3122_v42, %v4360_v43  ;;  %v3211_v45 = vpop.f32.mrb[90].mxu1  ;;  %4127 = vmatprep.subr.bf16.mxu1 %v4126_v21  ;;  %v3124_v46 = vpop.f32.mrb[91].mxu0  ;;  %4121 = vmatpush1.bf16.msra.mxu0 %v4120_v33  ;;  %v3227_v5 = vmax.f32 %v3208_v44, 0.0 }
0x1018   :  { %v3212_v47 = vadd.f32 %v3211_v45, %v4360_v43  ;;  %v3125_v14 = vadd.f32 %v3124_v46, %v4360_v43  ;;  %v3213_v31 = vpop.f32.mrb[91].mxu1  ;;  %4129 = vmatpush1.bf16.msra.mxu1 %v4128_v4 }
0x1019   :  { %v3228_v54 = vmax.f32 %v3123_v6, 0.0  ;;  %v3214_v55 = vadd.f32 %v3213_v31, %v4360_v43 }
0x101a   :  { %v3230_v59 = vmax.f32 %v3212_v47, 0.0  ;;  %v3229_v18 = vmax.f32 %v3125_v14, 0.0 }
0x101b   :  { %v4124_v19 = vpack.c.bf16 %v3228_v54, %v3224_v53  ;;  %v3231_v20 = vmax.f32 %v3214_v55, 0.0 }
0x101c   :  { %v4132_v10 = vpack.c.bf16 %v3230_v59, %v3226_v56  ;;  %v4122_v11 = vpack.c.bf16 %v3229_v18, %v3225_v57 }
0x101d   :  { %v4130_v12 = vpack.c.bf16 %v3231_v20, %v3227_v5 }
0x101e   :  { %4123 = vmatprep.subr.bf16.mxu0 %v4122_v11 }
0x101f   :  { %4131 = vmatprep.subr.bf16.mxu1 %v4130_v12  ;;  %4125 = vmatpush1.bf16.msra.mxu0 %v4124_v19 }
0x1020   :  { %4133 = vmatpush1.bf16.msra.mxu1 %v4132_v10 }
0x1022   :  { %3976 = vmatmul.mubr.msk.f32.vlgmr.msra.gmra.mrb[92].mxu0 %vm476_vm1, %v4729_v58 }
0x1023   :  { %3977 = vmatmul.mubr.msk.f32.vlgmr.msra.gmra.mrb[92].mxu1 %vm476_vm1, %v4729_v58  ;;  %3446 = vmatprep.mubr.f32.mxu0 %v4167_v3 }
0x1024   :  { %3535 = vmatprep.mubr.f32.mxu1 %v4167_v3 }
0x10f5   :  { %v3298_v16 = vpop.f32.mrb[92].mxu0 }
0x10f6   :  { %v3299_v49 = vadd.f32 %v3298_v16, %v4380_v15  ;;  %v3369_v50 = vpop.f32.mrb[92].mxu1  ;;  %v3300_v51 = vpop.f32.mrb[93].mxu0 }
0x10f7   :  { %v3370_v48 = vadd.f32 %v3369_v50, %v4380_v15  ;;  %v3301_v28 = vadd.f32 %v3300_v51, %v4380_v15  ;;  %v3371_v29 = vpop.f32.mrb[93].mxu1 }
0x10f8   :  { %v3374_v30 = vmul.f32 0.05, %v3299_v49  ;;  %v3372_v24 = vadd.f32 %v3371_v29, %v4380_v15 }
0x10f9   :  { %v3376_v25 = vmul.f32 0.05, %v3370_v48  ;;  %v3375_v26 = vmul.f32 0.05, %v3301_v28 }
0x10fa   :  { %v3377_v27 = vmul.f32 0.05, %v3372_v24  ;;  %v4943_v0 = vsub.f32 %v4877_v61, %v3374_v30 }
0x10fb   :  { %v4940_v62 = vsub.f32 %v4874_v60, %v3375_v26  ;;  %v4949_v2 = vsub.f32 %v4883_v9, %v3376_v25 }
0x10fc   :  { %v4946_v1 = vsub.f32 %v4880_v8, %v3377_v27 }
0x10fd   :  { %3382 = vmatprep.subr.mxu0 %v4940_v62 }
0x10fe   :  { %3471 = vmatprep.subr.mxu1 %v4946_v1  ;;  %3383 = vmatpush1.msra.mxu0 %v4943_v0 }
0x10ff   :  { %3472 = vmatpush1.msra.mxu1 %v4949_v2  ;;  %3978 = vmatmul.mubr.msk.f32.vlgmr.msra.gmra.mrb[94].mxu0 %vm77_vm0, %v4669_v36 }
0x1100   :  { %3982 = vmatmul.mubr.msk.f32.vlgmr.msra.gmra.mrb[94].mxu1 %vm77_vm0, %v4669_v36  ;;  %3452 = vmatprep.mubr.f32.mxu0 %v4167_v3 }
0x1101   :  { %3541 = vmatprep.mubr.f32.mxu1 %v4167_v3 }
0x1103   :  { %3979 = vmatmul.mubr.msk.f32.gmra.mrb[96].mxu0 %vm77_vm0, %v4680_v38 }
0x1104   :  { %3983 = vmatmul.mubr.msk.f32.gmra.mrb[96].mxu1 %vm77_vm0, %v4680_v38  ;;  %3458 = vmatprep.mubr.f32.mxu0 %v4167_v3 }
0x1105   :  { %3547 = vmatprep.mubr.f32.mxu1 %v4167_v3 }
0x1107   :  { %3980 = vmatmul.mubr.msk.f32.gmra.mrb[98].mxu0 %vm77_vm0, %v4691_v39 }
0x1108   :  { %3984 = vmatmul.mubr.msk.f32.gmra.mrb[98].mxu1 %vm77_vm0, %v4691_v39  ;;  %3464 = vmatprep.mubr.f32.mxu0 %v4167_v3 }
0x1109   :  { %3553 = vmatprep.mubr.f32.mxu1 %v4167_v3 }
0x110b   :  { %3981 = vmatmul.mubr.msk.f32.gmra.mrb[100].mxu0 %vm77_vm0, %v4702_v40 }
0x110c   :  { %3985 = vmatmul.mubr.msk.f32.gmra.mrb[100].mxu1 %vm77_vm0, %v4702_v40  ;;  %3640 = vmatprep.mubr.f32.mxu0 %v4167_v3 }
0x110d   :  { %3711 = vmatprep.mubr.f32.mxu1 %v4167_v3 }
0x11d2   :  { %v3448_v36 = vpop.f32.mrb[94].mxu0 }
0x11d3   :  { %v3537_v38 = vpop.f32.mrb[94].mxu1  ;;  %v3450_v60 = vpop.f32.mrb[95].mxu0  ;;  %v3449_v39 = vadd.f32 %v3448_v36, %v4345_v7 }
0x11d4   :  { %v3539_v61 = vpop.f32.mrb[95].mxu1  ;;  %v3538_v8 = vadd.f32 %v3537_v38, %v4345_v7  ;;  %v3451_v9 = vadd.f32 %v3450_v60, %v4345_v7 }
0x11d5   :  { %v3540_v33 = vadd.f32 %v3539_v61, %v4345_v7  ;;  %v3560_v52 = vmax.f32 %v3449_v39, 0.0 }
0x11d6   :  { %v3454_v32 = vpop.f32.mrb[96].mxu0  ;;  %v3562_v23 = vmax.f32 %v3538_v8, 0.0  ;;  %v3561_v41 = vmax.f32 %v3451_v9, 0.0 }
0x11d7   :  { %v3455_v34 = vadd.f32 %v3454_v32, %v4348_v13  ;;  %v3543_v40 = vpop.f32.mrb[96].mxu1  ;;  %v3456_v35 = vpop.f32.mrb[97].mxu0  ;;  %v3563_v45 = vmax.f32 %v3540_v33, 0.0 }
0x11d8   :  { %v3544_v63 = vadd.f32 %v3543_v40, %v4348_v13  ;;  %v3457_v4 = vadd.f32 %v3456_v35, %v4348_v13  ;;  %v3545_v17 = vpop.f32.mrb[97].mxu1 }
0x11d9   :  { %v3564_v21 = vmax.f32 %v3455_v34, 0.0  ;;  %v3546_v22 = vadd.f32 %v3545_v17, %v4348_v13 }
0x11da   :  { %v3566_v42 = vmax.f32 %v3544_v63, 0.0  ;;  %v3565_v44 = vmax.f32 %v3457_v4, 0.0  ;;  %v3460_v6 = vpop.f32.mrb[98].mxu0  ;;  %v33_v63 = vld [vmem:[%s5027_s1 + $0x38] sm:$0xff] }
0x11db   :  { %v4136_v7 = vpack.c.bf16 %v3564_v21, %v3560_v52  ;;  %v3567_v46 = vmax.f32 %v3546_v22, 0.0  ;;  %v3549_v47 = vpop.f32.mrb[98].mxu1  ;;  %v3462_v14 = vpop.f32.mrb[99].mxu0  ;;  %v3461_v56 = vadd.f32 %v3460_v6, %v4357_v37 }
0x11dc   :  { %v4144_v31 = vpack.c.bf16 %v3566_v42, %v3562_v23  ;;  %v4134_v53 = vpack.c.bf16 %v3565_v44, %v3561_v41  ;;  %v3551_v54 = vpop.f32.mrb[99].mxu1  ;;  %v3550_v57 = vadd.f32 %v3549_v47, %v4357_v37  ;;  %v3463_v13 = vadd.f32 %v3462_v14, %v4357_v37 }
0x11dd   :  { %v4142_v55 = vpack.c.bf16 %v3567_v46, %v3563_v45  ;;  %v3552_v18 = vadd.f32 %v3551_v54, %v4357_v37  ;;  %v3568_v16 = vmax.f32 %v3461_v56, 0.0 }
0x11de   :  { %v3466_v59 = vpop.f32.mrb[100].mxu0  ;;  %4135 = vmatprep.subr.bf16.mxu0 %v4134_v53  ;;  %v3570_v51 = vmax.f32 %v3550_v57, 0.0  ;;  %v3569_v48 = vmax.f32 %v3463_v13, 0.0 }
0x11df   :  { %v3467_v5 = vadd.f32 %v3466_v59, %v4360_v43  ;;  %v3555_v19 = vpop.f32.mrb[100].mxu1  ;;  %4143 = vmatprep.subr.bf16.mxu1 %v4142_v55  ;;  %v3468_v20 = vpop.f32.mrb[101].mxu0  ;;  %4137 = vmatpush1.bf16.msra.mxu0 %v4136_v7  ;;  %v3571_v29 = vmax.f32 %v3552_v18, 0.0 }
0x11e0   :  { %v3556_v10 = vadd.f32 %v3555_v19, %v4360_v43  ;;  %v3469_v11 = vadd.f32 %v3468_v20, %v4360_v43  ;;  %v3557_v12 = vpop.f32.mrb[101].mxu1  ;;  %4145 = vmatpush1.bf16.msra.mxu1 %v4144_v31 }
0x11e1   :  { %v3572_v49 = vmax.f32 %v3467_v5, 0.0  ;;  %v3558_v50 = vadd.f32 %v3557_v12, %v4360_v43 }
0x11e2   :  { %v3574_v28 = vmax.f32 %v3556_v10, 0.0  ;;  %v3573_v37 = vmax.f32 %v3469_v11, 0.0 }
0x11e3   :  { %v4140_v30 = vpack.c.bf16 %v3572_v49, %v3568_v16  ;;  %v3575_v24 = vmax.f32 %v3558_v50, 0.0 }
0x11e4   :  { %v4148_v25 = vpack.c.bf16 %v3574_v28, %v3570_v51  ;;  %v4138_v26 = vpack.c.bf16 %v3573_v37, %v3569_v48 }
0x11e5   :  { %v4146_v27 = vpack.c.bf16 %v3575_v24, %v3571_v29 }
0x11e6   :  { %4139 = vmatprep.subr.bf16.mxu0 %v4138_v26 }
0x11e7   :  { %4147 = vmatprep.subr.bf16.mxu1 %v4146_v27  ;;  %4141 = vmatpush1.bf16.msra.mxu0 %v4140_v30 }
0x11e8   :  { %4149 = vmatpush1.bf16.msra.mxu1 %v4148_v25 }
0x11ea   :  { %3986 = vmatmul.mubr.msk.f32.vlgmr.msra.gmra.mrb[102].mxu0 %vm476_vm1, %v4729_v58 }
0x11eb   :  { %3987 = vmatmul.mubr.msk.f32.vlgmr.msra.gmra.mrb[102].mxu1 %vm476_vm1, %v4729_v58  ;;  %3798 = vmatprep.mubr.f32.mxu0 %v4167_v3 }
0x11ec   :  { %3869 = vmatprep.mubr.f32.mxu1 %v4167_v3 }
0x12bd   :  { %v3642_v43 = vpop.f32.mrb[102].mxu0 }
0x12be   :  { %v3643_v36 = vadd.f32 %v3642_v43, %v4380_v15  ;;  %v3713_v38 = vpop.f32.mrb[102].mxu1  ;;  %v3644_v60 = vpop.f32.mrb[103].mxu0 }
0x12bf   :  { %v3714_v61 = vadd.f32 %v3713_v38, %v4380_v15  ;;  %v3645_v39 = vadd.f32 %v3644_v60, %v4380_v15  ;;  %v3715_v8 = vpop.f32.mrb[103].mxu1 }
0x12c0   :  { %v3718_v9 = vmul.f32 0.1, %v3643_v36  ;;  %v3716_v32 = vadd.f32 %v3715_v8, %v4380_v15  ;;  %v3729_v15 = vpop.permute.xlu1 %3728 }
0x12c1   :  { %v3720_v33 = vmul.f32 0.1, %v3714_v61  ;;  %v3719_v34 = vmul.f32 0.1, %v3645_v39 }
0x12c2   :  { %v3721_v58 = vmul.f32 0.1, %v3716_v32  ;;  %v3722_v3 = vsub.f32 %v4943_v0, %v3718_v9 }
0x12c3   :  { %v3723_v40 = vsub.f32 %v4940_v62, %v3719_v34  ;;  %v3724_v4 = vsub.f32 %v4949_v2, %v3720_v33 }
0x12c4   :  { %v3725_v35 = vsub.f32 %v4946_v1, %v3721_v58 }
0x12c5   :  { %3734 = vmatprep.subr.mxu0 %v3723_v40 }
0x12c6   :  { %3805 = vmatprep.subr.mxu1 %v3725_v35  ;;  %3735 = vmatpush1.msra.mxu0 %v3722_v3 }
0x12c7   :  { %3806 = vmatpush1.msra.mxu1 %v3724_v4  ;;  %3988 = vmatmul.mubr.msk.f32.vlgmr.msra.gmra.mrb[104].mxu0 %vm77_vm0, %v33_v63 }
0x12c8   :  { %3989 = vmatmul.mubr.msk.f32.vlgmr.msra.gmra.mrb[104].mxu1 %vm77_vm0, %v33_v63 }
0x139a   :  { %v3800_v62 = vpop.f32.mrb[104].mxu0 }
0x139b   :  { %v3801_v17 = vadd.f32 %v3800_v62, %v3729_v15  ;;  %v3871_v0 = vpop.f32.mrb[104].mxu1  ;;  %v3802_v52 = vpop.f32.mrb[105].mxu0 }
0x139c   :  { %v3872_v1 = vadd.f32 %v3871_v0, %v3729_v15  ;;  %v3803_v21 = vadd.f32 %v3802_v52, %v3729_v15  ;;  %v3873_v22 = vpop.f32.mrb[105].mxu1 }
0x139d   :  { %3876 = vst [vmem:[%s5029_s3] sm:$0xff] %v3801_v17  ;;  %v3874_v2 = vadd.f32 %v3873_v22, %v3729_v15 }
0x139e   :  { %3878 = vst [vmem:[%s5029_s3 + $0x10] sm:$0xff] %v3872_v1  ;;  %3877 = vst [vmem:[%s5029_s3 + $0x8] sm:$0xff] %v3803_v21 }
0x139f   :  { %3879 = vst [vmem:[%s5029_s3 + $0x18] sm:$0xff] %v3874_v2 }

</bundles_post_ra>
